<compile_context>
chip_gen: v7x
topology: tpu7x:2x2x1
jax: 0.10.0
libtpu: 0.0.40
codegen_flags: <defaults>
</compile_context>

<pallas_src>
import functools

import jax
import jax.numpy as jnp
from jax import lax
from jax.experimental import pallas as pl
from jax.experimental.pallas import tpu as pltpu


# ----------------------------- Pallas kernels ------------------------------

def _conv_pool_kernel(p_ref, w_ref, b_ref, conv_ref, pool_ref, *, Ho, Wo):
    """Per-image fused conv-as-matmul + bias, plus relu + 3x3 stride-2 maxpool.

    p:    (Ho*Wo, K)   im2col patches of one image (rows in (i, j) order)
    w:    (K, Cout)
    b:    (1, Cout)
    conv: (Ho*Wo, Cout)   raw conv output (consumed later by the RNN quads)
    pool: (Hp, Wp, Cout)  maxpool(relu(conv)), k=3, s=2, VALID
    """
    conv = (
        jnp.dot(p_ref[...], w_ref[...], preferred_element_type=jnp.float32)
        + b_ref[...]
    )
    conv_ref[...] = conv

    Hp, Wp, C = pool_ref.shape
    x = jnp.maximum(conv, 0.0).reshape(Ho, Wo, C)   # relu; reshape keeps the lane dim

    # max over the 3-wide window along W for every output column (contiguous slices only)
    cols = []
    for oj in range(Wp):
        w0 = lax.slice(x, (0, 2 * oj + 0, 0), (Ho, 2 * oj + 1, C))
        w1 = lax.slice(x, (0, 2 * oj + 1, 0), (Ho, 2 * oj + 2, C))
        w2 = lax.slice(x, (0, 2 * oj + 2, 0), (Ho, 2 * oj + 3, C))
        cols.append(jnp.maximum(jnp.maximum(w0, w1), w2))        # (Ho, 1, C)
    xw = jnp.concatenate(cols, axis=1)                           # (Ho, Wp, C)

    # max over the 3-wide window along H for every output row
    rows = []
    for oi in range(Hp):
        r0 = lax.slice(xw, (2 * oi + 0, 0, 0), (2 * oi + 1, Wp, C))
        r1 = lax.slice(xw, (2 * oi + 1, 0, 0), (2 * oi + 2, Wp, C))
        r2 = lax.slice(xw, (2 * oi + 2, 0, 0), (2 * oi + 3, Wp, C))
        rows.append(jnp.maximum(jnp.maximum(r0, r1), r2))        # (1, Wp, C)
    pool_ref[...] = jnp.concatenate(rows, axis=0)                # (Hp, Wp, C)


def _birnn_batched_kernel(x_ref, wblk_ref, bias_ref, wbd_ref, h_ref, xp_ref):
    """All 4 RNNs x 2 directions as ONE recurrence.

    x:    (T*B, 8*C)   column blocks = [seq_0 .. seq_3 | rev_0 .. rev_3]
    wblk: (8*C, 8*Hd)  block-diagonal W_ih^T per (rnn, dir)
    bias: (1, 8*Hd)    b_ih + b_hh per (rnn, dir)
    wbd:  (8*Hd, 8*Hd) block-diagonal W_hh^T per (rnn, dir)
    h:    (B, 8*Hd)    final hidden states, blocks [f0 f1 f2 f3 | b0 b1 b2 b3]
    xp:   (T*B, 8*Hd)  VMEM scratch -- precomputed input projections
    """
    B, H8 = h_ref.shape
    TB = x_ref.shape[0]
    T = TB // B

    # Hoisted out of the serial loop: one well-shaped matmul computes the input
    # projection for every timestep, RNN and direction (off-diagonal zero blocks of
    # wblk contribute exact zeros, so per-block results match the unbatched RNNs).
    xp_ref[...] = (
        jnp.dot(x_ref[...], wblk_ref[...], preferred_element_type=jnp.float32)
        + bias_ref[...]
    )

    wbd = wbd_ref[...]                     # keep W_hh^T resident in vregs
    h0 = jnp.zeros((B, H8), jnp.float32)

    U = 8                                  # manual unroll factor (divides T)
    while T % U:
        U //= 2

    def body(i, h):
        base = pl.multiple_of(i * (U * B), U * B)
        for u in range(U):                 # manual unroll for scheduler visibility
            xt = xp_ref[pl.ds(base + u * B, B), :]
            h = jnp.tanh(xt + jnp.dot(h, wbd, preferred_element_type=jnp.float32))
        return h

    h_ref[...] = lax.fori_loop(0, T // U, body, h0)


# ------------------------------ wrappers ------------------------------------

def conv_pool_pallas(x, w, b, stride, padding):
    """x: (B, Cin, H, W) NCHW; w: (Cout, Cin, kh, kw); b: (Cout,).

    Returns (conv_nhwc (B,Ho,Wo,Cout), pooled_nhwc (B,Hp,Wp,Cout))."""
    B, Cin, H, W = x.shape
    Cout, _, kh, kw = w.shape
    Ho = (H + 2 * padding - kh) // stride + 1
    Wo = (W + 2 * padding - kw) // stride + 1
    Hp = (Ho - 3) // 2 + 1
    Wp = (Wo - 3) // 2 + 1

    # im2col (XLA glue / data movement only): column order matches w.reshape(Cout, -1)
    xpad = jnp.pad(x, ((0, 0), (0, 0), (padding, padding), (padding, padding)))
    cols = []
    for ki in range(kh):
        for kj in range(kw):
            cols.append(
                lax.slice(
                    xpad,
                    (0, 0, ki, kj),
                    (B, Cin, ki + stride * (Ho - 1) + 1, kj + stride * (Wo - 1) + 1),
                    (1, 1, stride, stride),
                )
            )
    patches = jnp.stack(cols, axis=2).reshape(B, Cin * kh * kw, Ho, Wo)
    patches = patches.transpose(0, 2, 3, 1).reshape(B * Ho * Wo, Cin * kh * kw)

    wmat = w.reshape(Cout, Cin * kh * kw).T.astype(jnp.float32)   # (K, Cout)
    bmat = b.reshape(1, Cout).astype(jnp.float32)
    K = Cin * kh * kw

    kern = functools.partial(_conv_pool_kernel, Ho=Ho, Wo=Wo)
    conv_flat, pooled = pl.pallas_call(
        kern,
        out_shape=(
            jax.ShapeDtypeStruct((B * Ho * Wo, Cout), jnp.float32),
            jax.ShapeDtypeStruct((B, Hp, Wp, Cout), jnp.float32),
        ),
        grid=(B,),
        in_specs=[
            pl.BlockSpec((Ho * Wo, K), lambda bi: (bi, 0)),
            pl.BlockSpec((K, Cout), lambda bi: (0, 0)),
            pl.BlockSpec((1, Cout), lambda bi: (0, 0)),
        ],
        out_specs=(
            pl.BlockSpec((Ho * Wo, Cout), lambda bi: (bi, 0)),
            pl.BlockSpec((None, Hp, Wp, Cout), lambda bi: (bi, 0, 0, 0)),
        ),
        compiler_params=pltpu.CompilerParams(dimension_semantics=("parallel",)),
    )(patches, wmat, bmat)

    conv_nhwc = conv_flat.reshape(B, Ho, Wo, Cout)
    return conv_nhwc, pooled


def birnn_batched_pallas(xcat, wblk, bias, wbd, batch):
    """xcat: (T*B, 8*C); wblk: (8*C, 8*Hd); bias: (1, 8*Hd); wbd: (8*Hd, 8*Hd)."""
    TB, C8 = xcat.shape
    H8 = wbd.shape[0]
    return pl.pallas_call(
        _birnn_batched_kernel,
        out_shape=jax.ShapeDtypeStruct((batch, H8), jnp.float32),
        grid=(1,),
        in_specs=[
            pl.BlockSpec((TB, C8), lambda i: (0, 0)),
            pl.BlockSpec((C8, H8), lambda i: (0, 0)),
            pl.BlockSpec((1, H8), lambda i: (0, 0)),
            pl.BlockSpec((H8, H8), lambda i: (0, 0)),
        ],
        out_specs=pl.BlockSpec((batch, H8), lambda i: (0, 0)),
        scratch_shapes=[pltpu.VMEM((TB, H8), jnp.float32)],
        compiler_params=pltpu.CompilerParams(dimension_semantics=("arbitrary",)),
    )(xcat, wblk, bias, wbd)


def conv_rnn_forward(x, params, stride, padding, pool=True):
    conv_nhwc, pooled = conv_pool_pallas(
        x, params["conv_w"], params["conv_b"], stride, padding
    )
    B, Ho, Wo, C = conv_nhwc.shape
    T = Ho * Wo
    Hd = params["wbd"].shape[0] // 8

    # image_to_quad: torch reshapes the *contiguous NCHW* conv output as (B,Ho,Wo,C),
    # which is a memory reinterpretation, NOT a transpose; reproduce exactly.
    xc_nchw = jnp.transpose(conv_nhwc, (0, 3, 1, 2))
    y = xc_nchw.reshape(B, Ho, Wo, C)
    yt = jnp.transpose(y, (0, 2, 1, 3))
    quads = (
        y.reshape(B, T, C),
        jnp.flip(y, (1, 2)).reshape(B, T, C),
        yt.reshape(B, T, C),
        jnp.flip(yt, (1, 2)).reshape(B, T, C),
    )
    # torch: rnn_in = x_quad[i].reshape(-1, B, C)   (memory reinterpretation again)
    seqs = [q.reshape(T, B, C) for q in quads]
    fwd = [s.reshape(T * B, C) for s in seqs]          # forward-direction inputs
    rev = [s[::-1].reshape(T * B, C) for s in seqs]    # reverse direction reads flipped time
    xcat = jnp.concatenate(fwd + rev, axis=-1)         # (T*B, 8*C)

    h = birnn_batched_pallas(xcat, params["wblk"], params["bias"], params["wbd"], B)

    # reconstruct torch's h_n.reshape(B, -1) per RNN, then concatenate
    hf = h[:, : 4 * Hd].reshape(B, 4, Hd)
    hb = h[:, 4 * Hd:].reshape(B, 4, Hd)
    outs = []
    for i in range(4):
        hn_i = jnp.stack([hf[:, i, :], hb[:, i, :]], axis=0)   # (2, B, Hd)
        outs.append(hn_i.reshape(B, 2 * Hd))                   # torch memory reinterpretation
    rnn_out = jnp.concatenate(outs, axis=-1)

    if pool:
        xo = jnp.transpose(pooled, (0, 3, 1, 2))   # back to NCHW
    else:
        xo = jnp.maximum(xc_nchw, 0.0)             # relu-only branch (not exercised here)
    return xo, rnn_out


# ------------------------------ helpers / reference --------------------------

def block_diag(blocks):
    rows = sum(b.shape[0] for b in blocks)
    cols = sum(b.shape[1] for b in blocks)
    out = jnp.zeros((rows, cols), blocks[0].dtype)
    r = c = 0
    for b in blocks:
        out = out.at[r:r + b.shape[0], c:c + b.shape[1]].set(b)
        r += b.shape[0]
        c += b.shape[1]
    return out


def reference_forward(x, conv_w, conv_b, wih, whh, b_ih, b_hh, stride, padding):
    xc = lax.conv_general_dilated(
        x, conv_w, (stride, stride), [(padding, padding)] * 2,
        dimension_numbers=("NCHW", "OIHW", "NCHW"),
        precision=lax.Precision.HIGHEST,
    ) + conv_b[None, :, None, None]
    B, C, Ho, Wo = xc.shape
    T = Ho * Wo
    Hd = wih.shape[2]

    y = xc.reshape(B, Ho, Wo, C)
    yt = jnp.transpose(y, (0, 2, 1, 3))
    quads = [
        y.reshape(B, T, C),
        jnp.flip(y, (1, 2)).reshape(B, T, C),
        yt.reshape(B, T, C),
        jnp.flip(yt, (1, 2)).reshape(B, T, C),
    ]

    def run(seq, w_i, w_h, bias):
        def step(h, xt):
            return jnp.tanh(xt @ w_i.T + h @ w_h.T + bias), None
        h, _ = lax.scan(step, jnp.zeros((B, Hd), jnp.float32), seq)
        return h

    outs = []
    for i in range(4):
        seq = quads[i].reshape(T, B, C)
        hf = run(seq, wih[i, 0], whh[i, 0], b_ih[i, 0] + b_hh[i, 0])
        hb = run(seq[::-1], wih[i, 1], whh[i, 1], b_ih[i, 1] + b_hh[i, 1])
        outs.append(jnp.stack([hf, hb], axis=0).reshape(B, 2 * Hd))
    rnn_out = jnp.concatenate(outs, axis=-1)

    xr = jnp.maximum(xc, 0.0)
    xr = lax.reduce_window(xr, -jnp.inf, lax.max, (1, 1, 3, 3), (1, 1, 2, 2), "VALID")
    return xr, rnn_out


# -------------------------------- main ---------------------------------------

if __name__ == "__main__":
    # module config: ConvRNN(in_f=4, out_f=16, kernel=3, stride=1, padding=1, pool=True)
    in_f, out_f, ksize, stride, padding = 4, 16, 3, 1, 1
    Hd = out_f // 4
    B, H, W = 2, 16, 16

    key = jax.random.PRNGKey(0)
    ks = jax.random.split(key, 8)
    x = jax.random.normal(ks[0], (B, in_f, H, W), jnp.float32)

    conv_w = 0.1 * jax.random.normal(ks[1], (out_f, in_f, ksize, ksize), jnp.float32)
    conv_b = 0.1 * jax.random.normal(ks[2], (out_f,), jnp.float32)
    # per-RNN params, dir 0 = forward (weight_*_l0), dir 1 = reverse (weight_*_l0_reverse)
    wih = 0.2 * jax.random.normal(ks[3], (4, 2, Hd, out_f), jnp.float32)
    whh = 0.2 * jax.random.normal(ks[4], (4, 2, Hd, Hd), jnp.float32)
    b_ih = 0.2 * jax.random.normal(ks[5], (4, 2, Hd), jnp.float32)
    b_hh = 0.2 * jax.random.normal(ks[6], (4, 2, Hd), jnp.float32)

    # pack the 8 (rnn, direction) pairs, ordered [fwd 0..3 | bwd 0..3]
    order = [(i, 0) for i in range(4)] + [(i, 1) for i in range(4)]
    wblk = block_diag([wih[i, d].T for (i, d) in order])        # (8*C, 8*Hd)
    wbd = block_diag([whh[i, d].T for (i, d) in order])         # (8*Hd, 8*Hd)
    bias = jnp.concatenate([b_ih[i, d] + b_hh[i, d] for (i, d) in order])[None, :]

    params = {
        "conv_w": conv_w,
        "conv_b": conv_b,
        "wblk": wblk,
        "wbd": wbd,
        "bias": bias,
    }

    fwd = jax.jit(functools.partial(conv_rnn_forward, stride=stride, padding=padding, pool=True))
    x_out, rnn_out = fwd(x, params)
    jax.block_until_ready((x_out, rnn_out))

    # sanity check against a pure-JAX reference
    with jax.default_matmul_precision("highest"):
        x_gold, r_gold = reference_forward(x, conv_w, conv_b, wih, whh, b_ih, b_hh, stride, padding)
    assert x_out.shape == (B, out_f, 7, 7) and rnn_out.shape == (B, 2 * out_f)
    e1 = float(jnp.max(jnp.abs(x_out - x_gold)))
    e2 = float(jnp.max(jnp.abs(rnn_out - r_gold)))
    assert e1 < 5e-3 and e2 < 5e-3, (e1, e2)

    print("KERNEL_OK")
</pallas_src>

<mosaic_0001>
module attributes {stable_mosaic.version = 11 : i64} {
  func.func @_conv_pool_kernel(%arg0: i32, %arg1: memref<256x36xf32, #tpu.memory_space<vmem>>, %arg2: memref<36x16xf32, #tpu.memory_space<vmem>>, %arg3: memref<1x16xf32, #tpu.memory_space<vmem>>, %arg4: memref<256x16xf32, #tpu.memory_space<vmem>>, %arg5: memref<1x7x7x16xf32, #tpu.memory_space<vmem>>) attributes {dimension_semantics = [#tpu.dimension_semantics<parallel>], iteration_bounds = array<i64: 2>, scalar_prefetch = 0 : i64, scratch_operands = 0 : i64, tpu.core_type = #tpu.core_type<tc>, window_params = [{transform_indices = @transform_0, window_bounds = array<i64: 256, 36>}, {pipeline_mode = #tpu.pipeline_mode<synchronous>, transform_indices = @transform_1, window_bounds = array<i64: 36, 16>}, {pipeline_mode = #tpu.pipeline_mode<synchronous>, transform_indices = @transform_2, window_bounds = array<i64: 1, 16>}, {transform_indices = @transform_3, window_bounds = array<i64: 256, 16>}, {transform_indices = @transform_4, window_bounds = array<i64: 1, 7, 7, 16>}]} {
    %c0 = arith.constant 0 : index
    %c0_0 = arith.constant 0 : index
    %0 = vector.load %arg1[%c0, %c0_0] : memref<256x36xf32, #tpu.memory_space<vmem>>, vector<256x36xf32>
    %c0_1 = arith.constant 0 : index
    %c0_2 = arith.constant 0 : index
    %1 = vector.load %arg2[%c0_1, %c0_2] : memref<36x16xf32, #tpu.memory_space<vmem>>, vector<36x16xf32>
    %cst = arith.constant dense<0.000000e+00> : vector<256x16xf32>
    %2 = tpu.matmul %0, %1, %cst {dimension_numbers = #tpu.dot_dimension_numbers<[1], [0], [0], [1], [0, 0, 1, 1], [], []>} : vector<256x36xf32>, vector<36x16xf32>, vector<256x16xf32> -> vector<256x16xf32>
    %c0_3 = arith.constant 0 : index
    %c0_4 = arith.constant 0 : index
    %3 = vector.load %arg3[%c0_3, %c0_4] : memref<1x16xf32, #tpu.memory_space<vmem>>, vector<1x16xf32>
    %4 = vector.broadcast %3 : vector<1x16xf32> to vector<256x16xf32>
    %5 = arith.addf %2, %4 : vector<256x16xf32>
    %c0_5 = arith.constant 0 : index
    %c0_6 = arith.constant 0 : index
    %6 = vector.load %arg4[%c0_5, %c0_6] : memref<256x16xf32, #tpu.memory_space<vmem>>, vector<256x16xf32>
    tpu.vector_store %arg4[%c0_5, %c0_6], %5 {strides = array<i32>} : memref<256x16xf32, #tpu.memory_space<vmem>>, vector<256x16xf32>,
    %cst_7 = arith.constant 0.000000e+00 : f32
    %7 = vector.broadcast %cst_7 : f32 to vector<256x16xf32>
    %8 = arith.maximumf %5, %7 : vector<256x16xf32>
    %9 = vector.shape_cast %8 : vector<256x16xf32> to vector<16x16x16xf32>
    %10 = vector.extract_strided_slice %9 {offsets = [0, 0, 0], sizes = [16, 1, 16], strides = [1, 1, 1]} : vector<16x16x16xf32> to vector<16x1x16xf32>
    %11 = vector.extract_strided_slice %9 {offsets = [0, 1, 0], sizes = [16, 1, 16], strides = [1, 1, 1]} : vector<16x16x16xf32> to vector<16x1x16xf32>
    %12 = vector.extract_strided_slice %9 {offsets = [0, 2, 0], sizes = [16, 1, 16], strides = [1, 1, 1]} : vector<16x16x16xf32> to vector<16x1x16xf32>
    %13 = arith.maximumf %10, %11 : vector<16x1x16xf32>
    %14 = arith.maximumf %13, %12 : vector<16x1x16xf32>
    %15 = vector.extract_strided_slice %9 {offsets = [0, 2, 0], sizes = [16, 1, 16], strides = [1, 1, 1]} : vector<16x16x16xf32> to vector<16x1x16xf32>
    %16 = vector.extract_strided_slice %9 {offsets = [0, 3, 0], sizes = [16, 1, 16], strides = [1, 1, 1]} : vector<16x16x16xf32> to vector<16x1x16xf32>
    %17 = vector.extract_strided_slice %9 {offsets = [0, 4, 0], sizes = [16, 1, 16], strides = [1, 1, 1]} : vector<16x16x16xf32> to vector<16x1x16xf32>
    %18 = arith.maximumf %15, %16 : vector<16x1x16xf32>
    %19 = arith.maximumf %18, %17 : vector<16x1x16xf32>
    %20 = vector.extract_strided_slice %9 {offsets = [0, 4, 0], sizes = [16, 1, 16], strides = [1, 1, 1]} : vector<16x16x16xf32> to vector<16x1x16xf32>
    %21 = vector.extract_strided_slice %9 {offsets = [0, 5, 0], sizes = [16, 1, 16], strides = [1, 1, 1]} : vector<16x16x16xf32> to vector<16x1x16xf32>
    %22 = vector.extract_strided_slice %9 {offsets = [0, 6, 0], sizes = [16, 1, 16], strides = [1, 1, 1]} : vector<16x16x16xf32> to vector<16x1x16xf32>
    %23 = arith.maximumf %20, %21 : vector<16x1x16xf32>
    %24 = arith.maximumf %23, %22 : vector<16x1x16xf32>
    %25 = vector.extract_strided_slice %9 {offsets = [0, 6, 0], sizes = [16, 1, 16], strides = [1, 1, 1]} : vector<16x16x16xf32> to vector<16x1x16xf32>
    %26 = vector.extract_strided_slice %9 {offsets = [0, 7, 0], sizes = [16, 1, 16], strides = [1, 1, 1]} : vector<16x16x16xf32> to vector<16x1x16xf32>
    %27 = vector.extract_strided_slice %9 {offsets = [0, 8, 0], sizes = [16, 1, 16], strides = [1, 1, 1]} : vector<16x16x16xf32> to vector<16x1x16xf32>
    %28 = arith.maximumf %25, %26 : vector<16x1x16xf32>
    %29 = arith.maximumf %28, %27 : vector<16x1x16xf32>
    %30 = vector.extract_strided_slice %9 {offsets = [0, 8, 0], sizes = [16, 1, 16], strides = [1, 1, 1]} : vector<16x16x16xf32> to vector<16x1x16xf32>
    %31 = vector.extract_strided_slice %9 {offsets = [0, 9, 0], sizes = [16, 1, 16], strides = [1, 1, 1]} : vector<16x16x16xf32> to vector<16x1x16xf32>
    %32 = vector.extract_strided_slice %9 {offsets = [0, 10, 0], sizes = [16, 1, 16], strides = [1, 1, 1]} : vector<16x16x16xf32> to vector<16x1x16xf32>
    %33 = arith.maximumf %30, %31 : vector<16x1x16xf32>
    %34 = arith.maximumf %33, %32 : vector<16x1x16xf32>
    %35 = vector.extract_strided_slice %9 {offsets = [0, 10, 0], sizes = [16, 1, 16], strides = [1, 1, 1]} : vector<16x16x16xf32> to vector<16x1x16xf32>
    %36 = vector.extract_strided_slice %9 {offsets = [0, 11, 0], sizes = [16, 1, 16], strides = [1, 1, 1]} : vector<16x16x16xf32> to vector<16x1x16xf32>
    %37 = vector.extract_strided_slice %9 {offsets = [0, 12, 0], sizes = [16, 1, 16], strides = [1, 1, 1]} : vector<16x16x16xf32> to vector<16x1x16xf32>
    %38 = arith.maximumf %35, %36 : vector<16x1x16xf32>
    %39 = arith.maximumf %38, %37 : vector<16x1x16xf32>
    %40 = vector.extract_strided_slice %9 {offsets = [0, 12, 0], sizes = [16, 1, 16], strides = [1, 1, 1]} : vector<16x16x16xf32> to vector<16x1x16xf32>
    %41 = vector.extract_strided_slice %9 {offsets = [0, 13, 0], sizes = [16, 1, 16], strides = [1, 1, 1]} : vector<16x16x16xf32> to vector<16x1x16xf32>
    %42 = vector.extract_strided_slice %9 {offsets = [0, 14, 0], sizes = [16, 1, 16], strides = [1, 1, 1]} : vector<16x16x16xf32> to vector<16x1x16xf32>
    %43 = arith.maximumf %40, %41 : vector<16x1x16xf32>
    %44 = arith.maximumf %43, %42 : vector<16x1x16xf32>
    %45 = tpu.concatenate %14, %19, %24, %29, %34, %39, %44 in 1 : vector<16x1x16xf32>, vector<16x1x16xf32>, vector<16x1x16xf32>, vector<16x1x16xf32>, vector<16x1x16xf32>, vector<16x1x16xf32>, vector<16x1x16xf32> -> vector<16x7x16xf32>
    %46 = vector.extract_strided_slice %45 {offsets = [0, 0, 0], sizes = [1, 7, 16], strides = [1, 1, 1]} : vector<16x7x16xf32> to vector<1x7x16xf32>
    %47 = vector.extract_strided_slice %45 {offsets = [1, 0, 0], sizes = [1, 7, 16], strides = [1, 1, 1]} : vector<16x7x16xf32> to vector<1x7x16xf32>
    %48 = vector.extract_strided_slice %45 {offsets = [2, 0, 0], sizes = [1, 7, 16], strides = [1, 1, 1]} : vector<16x7x16xf32> to vector<1x7x16xf32>
    %49 = arith.maximumf %46, %47 : vector<1x7x16xf32>
    %50 = arith.maximumf %49, %48 : vector<1x7x16xf32>
    %51 = vector.extract_strided_slice %45 {offsets = [2, 0, 0], sizes = [1, 7, 16], strides = [1, 1, 1]} : vector<16x7x16xf32> to vector<1x7x16xf32>
    %52 = vector.extract_strided_slice %45 {offsets = [3, 0, 0], sizes = [1, 7, 16], strides = [1, 1, 1]} : vector<16x7x16xf32> to vector<1x7x16xf32>
    %53 = vector.extract_strided_slice %45 {offsets = [4, 0, 0], sizes = [1, 7, 16], strides = [1, 1, 1]} : vector<16x7x16xf32> to vector<1x7x16xf32>
    %54 = arith.maximumf %51, %52 : vector<1x7x16xf32>
    %55 = arith.maximumf %54, %53 : vector<1x7x16xf32>
    %56 = vector.extract_strided_slice %45 {offsets = [4, 0, 0], sizes = [1, 7, 16], strides = [1, 1, 1]} : vector<16x7x16xf32> to vector<1x7x16xf32>
    %57 = vector.extract_strided_slice %45 {offsets = [5, 0, 0], sizes = [1, 7, 16], strides = [1, 1, 1]} : vector<16x7x16xf32> to vector<1x7x16xf32>
    %58 = vector.extract_strided_slice %45 {offsets = [6, 0, 0], sizes = [1, 7, 16], strides = [1, 1, 1]} : vector<16x7x16xf32> to vector<1x7x16xf32>
    %59 = arith.maximumf %56, %57 : vector<1x7x16xf32>
    %60 = arith.maximumf %59, %58 : vector<1x7x16xf32>
    %61 = vector.extract_strided_slice %45 {offsets = [6, 0, 0], sizes = [1, 7, 16], strides = [1, 1, 1]} : vector<16x7x16xf32> to vector<1x7x16xf32>
    %62 = vector.extract_strided_slice %45 {offsets = [7, 0, 0], sizes = [1, 7, 16], strides = [1, 1, 1]} : vector<16x7x16xf32> to vector<1x7x16xf32>
    %63 = vector.extract_strided_slice %45 {offsets = [8, 0, 0], sizes = [1, 7, 16], strides = [1, 1, 1]} : vector<16x7x16xf32> to vector<1x7x16xf32>
    %64 = arith.maximumf %61, %62 : vector<1x7x16xf32>
    %65 = arith.maximumf %64, %63 : vector<1x7x16xf32>
    %66 = vector.extract_strided_slice %45 {offsets = [8, 0, 0], sizes = [1, 7, 16], strides = [1, 1, 1]} : vector<16x7x16xf32> to vector<1x7x16xf32>
    %67 = vector.extract_strided_slice %45 {offsets = [9, 0, 0], sizes = [1, 7, 16], strides = [1, 1, 1]} : vector<16x7x16xf32> to vector<1x7x16xf32>
    %68 = vector.extract_strided_slice %45 {offsets = [10, 0, 0], sizes = [1, 7, 16], strides = [1, 1, 1]} : vector<16x7x16xf32> to vector<1x7x16xf32>
    %69 = arith.maximumf %66, %67 : vector<1x7x16xf32>
    %70 = arith.maximumf %69, %68 : vector<1x7x16xf32>
    %71 = vector.extract_strided_slice %45 {offsets = [10, 0, 0], sizes = [1, 7, 16], strides = [1, 1, 1]} : vector<16x7x16xf32> to vector<1x7x16xf32>
    %72 = vector.extract_strided_slice %45 {offsets = [11, 0, 0], sizes = [1, 7, 16], strides = [1, 1, 1]} : vector<16x7x16xf32> to vector<1x7x16xf32>
    %73 = vector.extract_strided_slice %45 {offsets = [12, 0, 0], sizes = [1, 7, 16], strides = [1, 1, 1]} : vector<16x7x16xf32> to vector<1x7x16xf32>
    %74 = arith.maximumf %71, %72 : vector<1x7x16xf32>
    %75 = arith.maximumf %74, %73 : vector<1x7x16xf32>
    %76 = vector.extract_strided_slice %45 {offsets = [12, 0, 0], sizes = [1, 7, 16], strides = [1, 1, 1]} : vector<16x7x16xf32> to vector<1x7x16xf32>
    %77 = vector.extract_strided_slice %45 {offsets = [13, 0, 0], sizes = [1, 7, 16], strides = [1, 1, 1]} : vector<16x7x16xf32> to vector<1x7x16xf32>
    %78 = vector.extract_strided_slice %45 {offsets = [14, 0, 0], sizes = [1, 7, 16], strides = [1, 1, 1]} : vector<16x7x16xf32> to vector<1x7x16xf32>
    %79 = arith.maximumf %76, %77 : vector<1x7x16xf32>
    %80 = arith.maximumf %79, %78 : vector<1x7x16xf32>
    %81 = tpu.concatenate %50, %55, %60, %65, %70, %75, %80 in 0 : vector<1x7x16xf32>, vector<1x7x16xf32>, vector<1x7x16xf32>, vector<1x7x16xf32>, vector<1x7x16xf32>, vector<1x7x16xf32>, vector<1x7x16xf32> -> vector<7x7x16xf32>
    %c0_8 = arith.constant 0 : index
    %c0_9 = arith.constant 0 : index
    %c0_10 = arith.constant 0 : index
    %c0_11 = arith.constant 0 : index
    %82 = vector.load %arg5[%c0_8, %c0_9, %c0_10, %c0_11] : memref<1x7x7x16xf32, #tpu.memory_space<vmem>>, vector<1x7x7x16xf32>
    %83 = vector.shape_cast %82 : vector<1x7x7x16xf32> to vector<7x7x16xf32>
    %84 = vector.shape_cast %81 : vector<7x7x16xf32> to vector<1x7x7x16xf32>
    tpu.vector_store %arg5[%c0_8, %c0_9, %c0_10, %c0_11], %84 {strides = array<i32>} : memref<1x7x7x16xf32, #tpu.memory_space<vmem>>, vector<1x7x7x16xf32>,
    return
  }
  func.func @transform_0(%arg0: i32) -> (i32, i32) {
    %c0_i32 = arith.constant 0 : i32
    %c0_i32_0 = arith.constant 0 : i32
    return %arg0, %c0_i32 : i32, i32
  }
  func.func @transform_1(%arg0: i32) -> (i32, i32) {
    %c0_i32 = arith.constant 0 : i32
    %c0_i32_0 = arith.constant 0 : i32
    %c0_i32_1 = arith.constant 0 : i32
    return %c0_i32, %c0_i32_0 : i32, i32
  }
  func.func @transform_2(%arg0: i32) -> (i32, i32) {
    %c0_i32 = arith.constant 0 : i32
    %c0_i32_0 = arith.constant 0 : i32
    %c0_i32_1 = arith.constant 0 : i32
    return %c0_i32, %c0_i32_0 : i32, i32
  }
  func.func @transform_3(%arg0: i32) -> (i32, i32) {
    %c0_i32 = arith.constant 0 : i32
    %c0_i32_0 = arith.constant 0 : i32
    return %arg0, %c0_i32 : i32, i32
  }
  func.func @transform_4(%arg0: i32) -> (i32, i32, i32, i32) {
    %c0_i32 = arith.constant 0 : i32
    %c0_i32_0 = arith.constant 0 : i32
    %c0_i32_1 = arith.constant 0 : i32
    %c0_i32_2 = arith.constant 0 : i32
    return %arg0, %c0_i32, %c0_i32_0, %c0_i32_1 : i32, i32, i32, i32
  }
}

module attributes {stable_mosaic.version = 11 : i64} {
  func.func @_birnn_batched_kernel(%arg0: i32, %arg1: memref<512x128xf32, #tpu.memory_space<vmem>>, %arg2: memref<128x32xf32, #tpu.memory_space<vmem>>, %arg3: memref<1x32xf32, #tpu.memory_space<vmem>>, %arg4: memref<32x32xf32, #tpu.memory_space<vmem>>, %arg5: memref<2x32xf32, #tpu.memory_space<vmem>>, %arg6: memref<512x32xf32, #tpu.memory_space<vmem>>) attributes {dimension_semantics = [#tpu.dimension_semantics<arbitrary>], iteration_bounds = array<i64: 1>, scalar_prefetch = 0 : i64, scratch_operands = 1 : i64, tpu.core_type = #tpu.core_type<tc>, window_params = [{pipeline_mode = #tpu.pipeline_mode<synchronous>, transform_indices = @transform_0, window_bounds = array<i64: 512, 128>}, {pipeline_mode = #tpu.pipeline_mode<synchronous>, transform_indices = @transform_1, window_bounds = array<i64: 128, 32>}, {pipeline_mode = #tpu.pipeline_mode<synchronous>, transform_indices = @transform_2, window_bounds = array<i64: 1, 32>}, {pipeline_mode = #tpu.pipeline_mode<synchronous>, transform_indices = @transform_3, window_bounds = array<i64: 32, 32>}, {pipeline_mode = #tpu.pipeline_mode<synchronous>, transform_indices = @transform_4, window_bounds = array<i64: 2, 32>}]} {
    %c0 = arith.constant 0 : index
    %c0_0 = arith.constant 0 : index
    %0 = vector.load %arg1[%c0, %c0_0] : memref<512x128xf32, #tpu.memory_space<vmem>>, vector<512x128xf32>
    %c0_1 = arith.constant 0 : index
    %c0_2 = arith.constant 0 : index
    %1 = vector.load %arg2[%c0_1, %c0_2] : memref<128x32xf32, #tpu.memory_space<vmem>>, vector<128x32xf32>
    %cst = arith.constant dense<0.000000e+00> : vector<512x32xf32>
    %2 = tpu.matmul %0, %1, %cst {dimension_numbers = #tpu.dot_dimension_numbers<[1], [0], [0], [1], [0, 0, 1, 1], [], []>} : vector<512x128xf32>, vector<128x32xf32>, vector<512x32xf32> -> vector<512x32xf32>
    %c0_3 = arith.constant 0 : index
    %c0_4 = arith.constant 0 : index
    %3 = vector.load %arg3[%c0_3, %c0_4] : memref<1x32xf32, #tpu.memory_space<vmem>>, vector<1x32xf32>
    %4 = vector.broadcast %3 : vector<1x32xf32> to vector<512x32xf32>
    %5 = arith.addf %2, %4 : vector<512x32xf32>
    %c0_5 = arith.constant 0 : index
    %c0_6 = arith.constant 0 : index
    %6 = vector.load %arg6[%c0_5, %c0_6] : memref<512x32xf32, #tpu.memory_space<vmem>>, vector<512x32xf32>
    tpu.vector_store %arg6[%c0_5, %c0_6], %5 {strides = array<i32>} : memref<512x32xf32, #tpu.memory_space<vmem>>, vector<512x32xf32>,
    %c0_7 = arith.constant 0 : index
    %c0_8 = arith.constant 0 : index
    %7 = vector.load %arg4[%c0_7, %c0_8] : memref<32x32xf32, #tpu.memory_space<vmem>>, vector<32x32xf32>
    %cst_9 = arith.constant 0.000000e+00 : f32
    %8 = vector.broadcast %cst_9 : f32 to vector<2x32xf32>
    %c0_i32 = arith.constant 0 : i32
    %c32_i32 = arith.constant 32 : i32
    %9 = arith.addi %c0_i32, %c32_i32 : i32
    %c1_i32 = arith.constant 1 : i32
    %10 = scf.for %arg7 = %c0_i32 to %9 step %c1_i32 iter_args(%arg8 = %8) -> (vector<2x32xf32>)  : i32 {
      %c16_i32 = arith.constant 16 : i32
      %12 = arith.muli %arg7, %c16_i32 : i32
      %13 = tpu.assume_multiple %12, 16 : i32
      %c0_i32_13 = arith.constant 0 : i32
      %14 = arith.addi %13, %c0_i32_13 : i32
      %15 = arith.index_cast %14 : i32 to index
      %c0_14 = arith.constant 0 : index
      %16 = vector.load %arg6[%15, %c0_14] : memref<512x32xf32, #tpu.memory_space<vmem>>, vector<2x32xf32>
      %cst_15 = arith.constant dense<0.000000e+00> : vector<2x32xf32>
      %17 = tpu.matmul %arg8, %7, %cst_15 {dimension_numbers = #tpu.dot_dimension_numbers<[1], [0], [0], [1], [0, 0, 1, 1], [], []>} : vector<2x32xf32>, vector<32x32xf32>, vector<2x32xf32> -> vector<2x32xf32>
      %18 = arith.addf %16, %17 : vector<2x32xf32>
      %19 = math.tanh %18 : vector<2x32xf32>
      %c2_i32 = arith.constant 2 : i32
      %20 = arith.addi %13, %c2_i32 : i32
      %21 = arith.index_cast %20 : i32 to index
      %c0_16 = arith.constant 0 : index
      %22 = vector.load %arg6[%21, %c0_16] : memref<512x32xf32, #tpu.memory_space<vmem>>, vector<2x32xf32>
      %cst_17 = arith.constant dense<0.000000e+00> : vector<2x32xf32>
      %23 = tpu.matmul %19, %7, %cst_17 {dimension_numbers = #tpu.dot_dimension_numbers<[1], [0], [0], [1], [0, 0, 1, 1], [], []>} : vector<2x32xf32>, vector<32x32xf32>, vector<2x32xf32> -> vector<2x32xf32>
      %24 = arith.addf %22, %23 : vector<2x32xf32>
      %25 = math.tanh %24 : vector<2x32xf32>
      %c4_i32 = arith.constant 4 : i32
      %26 = arith.addi %13, %c4_i32 : i32
      %27 = arith.index_cast %26 : i32 to index
      %c0_18 = arith.constant 0 : index
      %28 = vector.load %arg6[%27, %c0_18] : memref<512x32xf32, #tpu.memory_space<vmem>>, vector<2x32xf32>
      %cst_19 = arith.constant dense<0.000000e+00> : vector<2x32xf32>
      %29 = tpu.matmul %25, %7, %cst_19 {dimension_numbers = #tpu.dot_dimension_numbers<[1], [0], [0], [1], [0, 0, 1, 1], [], []>} : vector<2x32xf32>, vector<32x32xf32>, vector<2x32xf32> -> vector<2x32xf32>
      %30 = arith.addf %28, %29 : vector<2x32xf32>
      %31 = math.tanh %30 : vector<2x32xf32>
      %c6_i32 = arith.constant 6 : i32
      %32 = arith.addi %13, %c6_i32 : i32
      %33 = arith.index_cast %32 : i32 to index
      %c0_20 = arith.constant 0 : index
      %34 = vector.load %arg6[%33, %c0_20] : memref<512x32xf32, #tpu.memory_space<vmem>>, vector<2x32xf32>
      %cst_21 = arith.constant dense<0.000000e+00> : vector<2x32xf32>
      %35 = tpu.matmul %31, %7, %cst_21 {dimension_numbers = #tpu.dot_dimension_numbers<[1], [0], [0], [1], [0, 0, 1, 1], [], []>} : vector<2x32xf32>, vector<32x32xf32>, vector<2x32xf32> -> vector<2x32xf32>
      %36 = arith.addf %34, %35 : vector<2x32xf32>
      %37 = math.tanh %36 : vector<2x32xf32>
      %c8_i32 = arith.constant 8 : i32
      %38 = arith.addi %13, %c8_i32 : i32
      %39 = arith.index_cast %38 : i32 to index
      %c0_22 = arith.constant 0 : index
      %40 = vector.load %arg6[%39, %c0_22] : memref<512x32xf32, #tpu.memory_space<vmem>>, vector<2x32xf32>
      %cst_23 = arith.constant dense<0.000000e+00> : vector<2x32xf32>
      %41 = tpu.matmul %37, %7, %cst_23 {dimension_numbers = #tpu.dot_dimension_numbers<[1], [0], [0], [1], [0, 0, 1, 1], [], []>} : vector<2x32xf32>, vector<32x32xf32>, vector<2x32xf32> -> vector<2x32xf32>
      %42 = arith.addf %40, %41 : vector<2x32xf32>
      %43 = math.tanh %42 : vector<2x32xf32>
      %c10_i32 = arith.constant 10 : i32
      %44 = arith.addi %13, %c10_i32 : i32
      %45 = arith.index_cast %44 : i32 to index
      %c0_24 = arith.constant 0 : index
      %46 = vector.load %arg6[%45, %c0_24] : memref<512x32xf32, #tpu.memory_space<vmem>>, vector<2x32xf32>
      %cst_25 = arith.constant dense<0.000000e+00> : vector<2x32xf32>
      %47 = tpu.matmul %43, %7, %cst_25 {dimension_numbers = #tpu.dot_dimension_numbers<[1], [0], [0], [1], [0, 0, 1, 1], [], []>} : vector<2x32xf32>, vector<32x32xf32>, vector<2x32xf32> -> vector<2x32xf32>
      %48 = arith.addf %46, %47 : vector<2x32xf32>
      %49 = math.tanh %48 : vector<2x32xf32>
      %c12_i32 = arith.constant 12 : i32
      %50 = arith.addi %13, %c12_i32 : i32
      %51 = arith.index_cast %50 : i32 to index
      %c0_26 = arith.constant 0 : index
      %52 = vector.load %arg6[%51, %c0_26] : memref<512x32xf32, #tpu.memory_space<vmem>>, vector<2x32xf32>
      %cst_27 = arith.constant dense<0.000000e+00> : vector<2x32xf32>
      %53 = tpu.matmul %49, %7, %cst_27 {dimension_numbers = #tpu.dot_dimension_numbers<[1], [0], [0], [1], [0, 0, 1, 1], [], []>} : vector<2x32xf32>, vector<32x32xf32>, vector<2x32xf32> -> vector<2x32xf32>
      %54 = arith.addf %52, %53 : vector<2x32xf32>
      %55 = math.tanh %54 : vector<2x32xf32>
      %c14_i32 = arith.constant 14 : i32
      %56 = arith.addi %13, %c14_i32 : i32
      %57 = arith.index_cast %56 : i32 to index
      %c0_28 = arith.constant 0 : index
      %58 = vector.load %arg6[%57, %c0_28] : memref<512x32xf32, #tpu.memory_space<vmem>>, vector<2x32xf32>
      %cst_29 = arith.constant dense<0.000000e+00> : vector<2x32xf32>
      %59 = tpu.matmul %55, %7, %cst_29 {dimension_numbers = #tpu.dot_dimension_numbers<[1], [0], [0], [1], [0, 0, 1, 1], [], []>} : vector<2x32xf32>, vector<32x32xf32>, vector<2x32xf32> -> vector<2x32xf32>
      %60 = arith.addf %58, %59 : vector<2x32xf32>
      %61 = math.tanh %60 : vector<2x32xf32>
      scf.yield %61 : vector<2x32xf32>
    }
    %c32_i32_10 = arith.constant 32 : i32
    %c0_11 = arith.constant 0 : index
    %c0_12 = arith.constant 0 : index
    %11 = vector.load %arg5[%c0_11, %c0_12] : memref<2x32xf32, #tpu.memory_space<vmem>>, vector<2x32xf32>
    tpu.vector_store %arg5[%c0_11, %c0_12], %10 {strides = array<i32>} : memref<2x32xf32, #tpu.memory_space<vmem>>, vector<2x32xf32>,
    return
  }
  func.func @transform_0(%arg0: i32) -> (i32, i32) {
    %c0_i32 = arith.constant 0 : i32
    %c0_i32_0 = arith.constant 0 : i32
    %c0_i32_1 = arith.constant 0 : i32
    return %c0_i32, %c0_i32_0 : i32, i32
  }
  func.func @transform_1(%arg0: i32) -> (i32, i32) {
    %c0_i32 = arith.constant 0 : i32
    %c0_i32_0 = arith.constant 0 : i32
    %c0_i32_1 = arith.constant 0 : i32
    return %c0_i32, %c0_i32_0 : i32, i32
  }
  func.func @transform_2(%arg0: i32) -> (i32, i32) {
    %c0_i32 = arith.constant 0 : i32
    %c0_i32_0 = arith.constant 0 : i32
    %c0_i32_1 = arith.constant 0 : i32
    return %c0_i32, %c0_i32_0 : i32, i32
  }
  func.func @transform_3(%arg0: i32) -> (i32, i32) {
    %c0_i32 = arith.constant 0 : i32
    %c0_i32_0 = arith.constant 0 : i32
    %c0_i32_1 = arith.constant 0 : i32
    return %c0_i32, %c0_i32_0 : i32, i32
  }
  func.func @transform_4(%arg0: i32) -> (i32, i32) {
    %c0_i32 = arith.constant 0 : i32
    %c0_i32_0 = arith.constant 0 : i32
    %c0_i32_1 = arith.constant 0 : i32
    return %c0_i32, %c0_i32_0 : i32, i32
  }
}

</mosaic_0001>

<bundles_post_ra>
// kernel: conv_rnn_forward.2
= control target key start
LH: loop header
LB: loop body
LE: loop exit
PB: predicated region body
PF: predicated region fallthrough
CT: control target
= control target key end

     0   :  { %s1500_s15 = smov 0   ;;  %s1999_s0 = inlined_call_operand.vmem [shape: f32[512,36], index: 0, kind: input, shape index: {}]   ;;  %s2000_s1 = inlined_call_operand.vmem [shape: f32[36,16], index: 1, kind: input, shape index: {}]   ;;  %s2001_s2 = inlined_call_operand.vmem [shape: f32[1,16], index: 2, kind: input, shape index: {}]   ;;  %s2002_s3 = inlined_call_operand.vmem [shape: f32[512,16], index: 3, kind: output, shape index: {0}]   ;;  %s2003_s4 = inlined_call_operand.vmem [shape: f32[2,7,7,16], index: 4, kind: output, shape index: {1}]  }
   0x1 LB: > { %s1506_s16 = sadd.s32 4294967295, %s1473_s15   ;;  %p1307_p0 = scmp.ge.s32.totalorder %s1473_s15, 1  ;;  %s1473_s15 = sphi %s1500_s15, %s15_s15  }
   0x2   : > { %p166_p1 = scmp.lt.s32.totalorder %s1473_s15, 3 }
   0x4   : > { %p167_p2 = pnand %p1307_p0, %p166_p1 }
   0x5   : > { %v246_v0 = vld [vmem:[%s2000_s1] sm:$0xff] (!%p167_p2)  ;;  %v247_v1 = vld [vmem:[%s2000_s1 + $0x8] sm:$0xff] (!%p167_p2)  ;;  %v248_v2 = vld [vmem:[%s2000_s1 + $0x10] sm:$0xff] (!%p167_p2)  ;;  %s1308_s23 = sshll.u32 (!%p167_p2), %s1506_s16, 5  ;;  %vm355_vm0 = vcmask (!%p167_p2), 1043456   ;;  %vm258_vm1 = vcmask (!%p167_p2), 293888  }
   0x6   : > { %170 = sbr.rel (%p167_p2) target bundleno = 340 (0x154), region = 32  ;;  %v1444_v3 = vpack.c.bf16 (!%p167_p2), %v247_v1, %v246_v0  ;;  %v249_v4 = vld [vmem:[%s2000_s1 + $0x18] sm:$0xff] (!%p167_p2)  ;;  %p198_p3 = scmp.lt.s32.totalorder (!%p167_p2), %s1308_s23, 63  ;;  %v250_v6 = vld [vmem:[%s2000_s1 + $0x20] sm:$0xf] (!%p167_p2)  ;;  %vm584_vm2 = vcmask (!%p167_p2), 130048  }
   0x7   : > { %v1448_v5 = vpack.c.bf16 (!%p167_p2), %v249_v4, %v248_v2  ;;  %v1607_v39 = vld [vmem:[%s2001_s2] ss:$0 sm:$0xff] (!%p167_p2)  ;;  %vm1097_vm3 = vcmask (!%p167_p2), 1040384   ;;  %vm1113_vm4 = vcmask (!%p167_p2), 1041408   ;;  %vm1129_vm5 = vcmask (!%p167_p2), 1042432   ;;  %p209_p4 = scmp.lt.s32.totalorder (!%p167_p2), %s1506_s16, 1 }
   0x8   : > { %1445 = vmatprep.subr.bf16.mxu0 (!%p167_p2), %v1444_v3  ;;  %1452 = vmatprep.subr.bf16.mxu1 (!%p167_p2), %v1444_v3  ;;  %vm1160_vm6 = vcmask (!%p167_p2), 1044480   ;;  %vm1176_vm7 = vcmask (!%p167_p2), 1045504   ;;  %vm1206_vm8 = vcmask (!%p167_p2), 129024  }
   0x9   : > { %1447 = vmatpush3.bf16.msra.mxu0 (!%p167_p2), %v1444_v3  ;;  %1455 = vmatpush3.bf16.msra.mxu1 (!%p167_p2), %v1444_v3 }
   0xa   : > { %1449 = vmatprep.subr.bf16.mxu0 (!%p167_p2), %v1448_v5  ;;  %1453 = vmatprep.subr.bf16.mxu1 (!%p167_p2), %v1448_v5 }
   0xd   : > { %s2005_s23 = smov (!%p198_p3, %s1308_s23), 63  ;;  %1451 = vmatpush3.bf16.msra.mxu0 %v1448_v5  ;;  %1456 = vmatpush3.bf16.msra.mxu1 %v1448_v5  ;;  %s2007_s16 = smov (!%p209_p4, %s1506_s16), 1 }
   0xe   : > { %s1309_s26 = sshll.u32 %s2005_s23, 3  ;;  %1394 = vmatprep.subr.msk.mxu0 %vm355_vm0, %v250_v6  ;;  %1454 = vmatprep.subr.msk.mxu1 %vm355_vm0, %v250_v6  ;;  %s1458_s11 = smul.u32 56, %s2007_s16 }
   0xf   : > { %s1534_s5 = scalar_lea.vmem %s1999_s0, %s1309_s26  ;;  %s1614_s10 = scalar_lea.vmem %s2002_s3, %s1309_s26 }
  0x10   : > { %v214_v7 = vld [vmem:[%s1534_s5] sm:$0xff]  ;;  %v215_v9 = vld [vmem:[%s1534_s5 + $0x8] sm:$0xff]  ;;  %v216_v11 = vld [vmem:[%s1534_s5 + $0x10] sm:$0xff]  ;;  %s1804_s14 = scalar_lea.vmem %s2003_s4, %s1458_s11 }
  0x11   : > { %v230_v8 = vld [vmem:[%s1534_s5 + $0x80] sm:$0xff]  ;;  %1396 = vmatprep.mubr.msk.f32.mxu0 %vm258_vm1, %v214_v7  ;;  %v231_v10 = vld [vmem:[%s1534_s5 + $0x88] sm:$0xff]  ;;  %v232_v12 = vld [vmem:[%s1534_s5 + $0x90] sm:$0xff]  ;;  %1395 = vmatpush3.msk.msra.mxu0 %vm355_vm0, %v250_v6 }
  0x12   : > { %1420 = vmatprep.mubr.msk.f32.mxu1 %vm258_vm1, %v230_v8  ;;  %1457 = vmatpush3.msk.msra.mxu1 %vm355_vm0, %v250_v6  ;;  %v217_v13 = vld [vmem:[%s1534_s5 + $0x18] sm:$0xff]  ;;  %v218_v15 = vld [vmem:[%s1534_s5 + $0x20] sm:$0xff]  ;;  %v219_v17 = vld [vmem:[%s1534_s5 + $0x28] sm:$0xff] }
  0x13   : > { %1397 = vmatmul.mubr.msk.f32.vlgmr.msra.gmra.mrb[0].mxu0 %vm258_vm1, %v215_v9  ;;  %1421 = vmatmul.mubr.msk.f32.vlgmr.msra.gmra.mrb[0].mxu1 %vm258_vm1, %v231_v10  ;;  %v233_v14 = vld [vmem:[%s1534_s5 + $0x98] sm:$0xff]  ;;  %v234_v16 = vld [vmem:[%s1534_s5 + $0xa0] sm:$0xff]  ;;  %v235_v18 = vld [vmem:[%s1534_s5 + $0xa8] sm:$0xff] }
  0x14   : > { %1399 = vmatprep.mubr.msk.f32.mxu0 %vm258_vm1, %v216_v11  ;;  %1423 = vmatprep.mubr.msk.f32.mxu1 %vm258_vm1, %v232_v12  ;;  %v220_v19 = vld [vmem:[%s1534_s5 + $0x30] sm:$0xff]  ;;  %v221_v21 = vld [vmem:[%s1534_s5 + $0x38] sm:$0xff]  ;;  %v222_v23 = vld [vmem:[%s1534_s5 + $0x40] sm:$0xff] }
  0x15   : > { %v236_v20 = vld [vmem:[%s1534_s5 + $0xb0] sm:$0xff]  ;;  %v237_v22 = vld [vmem:[%s1534_s5 + $0xb8] sm:$0xff]  ;;  %v238_v24 = vld [vmem:[%s1534_s5 + $0xc0] sm:$0xff] }
  0x16   : > { %v223_v25 = vld [vmem:[%s1534_s5 + $0x48] sm:$0xff]  ;;  %v224_v27 = vld [vmem:[%s1534_s5 + $0x50] sm:$0xff]  ;;  %v225_v29 = vld [vmem:[%s1534_s5 + $0x58] sm:$0xff] }
  0x17   : > { %1400 = vmatmul.mubr.msk.f32.gmra.mrb[2].mxu0 %vm258_vm1, %v217_v13  ;;  %1424 = vmatmul.mubr.msk.f32.gmra.mrb[2].mxu1 %vm258_vm1, %v233_v14  ;;  %v239_v26 = vld [vmem:[%s1534_s5 + $0xc8] sm:$0xff]  ;;  %v240_v28 = vld [vmem:[%s1534_s5 + $0xd0] sm:$0xff]  ;;  %v241_v30 = vld [vmem:[%s1534_s5 + $0xd8] sm:$0xff] }
  0x18   : > { %1402 = vmatprep.mubr.msk.f32.mxu0 %vm258_vm1, %v218_v15  ;;  %1426 = vmatprep.mubr.msk.f32.mxu1 %vm258_vm1, %v234_v16  ;;  %v226_v31 = vld [vmem:[%s1534_s5 + $0x60] sm:$0xff]  ;;  %v227_v33 = vld [vmem:[%s1534_s5 + $0x68] sm:$0xff]  ;;  %v228_v35 = vld [vmem:[%s1534_s5 + $0x70] sm:$0xff] }
  0x19   : > { %v242_v32 = vld [vmem:[%s1534_s5 + $0xe0] sm:$0xff]  ;;  %v243_v34 = vld [vmem:[%s1534_s5 + $0xe8] sm:$0xff]  ;;  %v244_v36 = vld [vmem:[%s1534_s5 + $0xf0] sm:$0xff] }
  0x1a   : > { %v229_v37 = vld [vmem:[%s1534_s5 + $0x78] sm:$0xff] }
  0x1b   : > { %1403 = vmatmul.mubr.msk.f32.gmra.mrb[4].mxu0 %vm258_vm1, %v219_v17  ;;  %1427 = vmatmul.mubr.msk.f32.gmra.mrb[4].mxu1 %vm258_vm1, %v235_v18  ;;  %v245_v38 = vld [vmem:[%s1534_s5 + $0xf8] sm:$0xff] }
  0x1c   : > { %1405 = vmatprep.mubr.msk.f32.mxu0 %vm258_vm1, %v220_v19  ;;  %1429 = vmatprep.mubr.msk.f32.mxu1 %vm258_vm1, %v236_v20 }
  0x1f   : > { %1406 = vmatmul.mubr.msk.f32.gmra.mrb[6].mxu0 %vm258_vm1, %v221_v21  ;;  %1430 = vmatmul.mubr.msk.f32.gmra.mrb[6].mxu1 %vm258_vm1, %v237_v22 }
  0x20   : > { %1408 = vmatprep.mubr.msk.f32.mxu0 %vm258_vm1, %v222_v23  ;;  %1432 = vmatprep.mubr.msk.f32.mxu1 %vm258_vm1, %v238_v24 }
  0x23   : > { %1409 = vmatmul.mubr.msk.f32.gmra.mrb[8].mxu0 %vm258_vm1, %v223_v25  ;;  %1433 = vmatmul.mubr.msk.f32.gmra.mrb[8].mxu1 %vm258_vm1, %v239_v26 }
  0x24   : > { %1411 = vmatprep.mubr.msk.f32.mxu0 %vm258_vm1, %v224_v27  ;;  %1435 = vmatprep.mubr.msk.f32.mxu1 %vm258_vm1, %v240_v28 }
  0x27   : > { %1412 = vmatmul.mubr.msk.f32.gmra.mrb[10].mxu0 %vm258_vm1, %v225_v29  ;;  %1436 = vmatmul.mubr.msk.f32.gmra.mrb[10].mxu1 %vm258_vm1, %v241_v30 }
  0x28   : > { %1414 = vmatprep.mubr.msk.f32.mxu0 %vm258_vm1, %v226_v31  ;;  %1438 = vmatprep.mubr.msk.f32.mxu1 %vm258_vm1, %v242_v32 }
  0x2b   : > { %1415 = vmatmul.mubr.msk.f32.gmra.mrb[12].mxu0 %vm258_vm1, %v227_v33  ;;  %1439 = vmatmul.mubr.msk.f32.gmra.mrb[12].mxu1 %vm258_vm1, %v243_v34 }
  0x2c   : > { %1417 = vmatprep.mubr.msk.f32.mxu0 %vm258_vm1, %v228_v35  ;;  %1441 = vmatprep.mubr.msk.f32.mxu1 %vm258_vm1, %v244_v36 }
  0x2f   : > { %1418 = vmatmul.mubr.msk.f32.gmra.mrb[14].mxu0 %vm258_vm1, %v229_v37  ;;  %1442 = vmatmul.mubr.msk.f32.gmra.mrb[14].mxu1 %vm258_vm1, %v245_v38 }
  0xe6   : > { %v1398_v40 = vpop.f32.mrb[0].mxu0  ;;  %v1422_v41 = vpop.f32.mrb[0].mxu1 }
  0xe7   : > { %v431_v42 = vadd.f32 %v1398_v40, %v1607_v39  ;;  %v511_v43 = vadd.f32 %v1422_v41, %v1607_v39  ;;  %v425_v44 = vpop.f32.mrb[1].mxu0  ;;  %v505_v45 = vpop.f32.mrb[1].mxu1 }
  0xe8   : > { %v426_v46 = vadd.f32 %v1607_v39, %v425_v44  ;;  %v506_v47 = vadd.f32 %v1607_v39, %v505_v45 }
  0xe9   : > { %586 = vst.msk [vmem:[%s1614_s10 + $0x8] sm:$0xff] %vm584_vm2, %v431_v42  ;;  %v618_v48 = vmax.f32 %v431_v42, 0.0  ;;  %602 = vst.msk [vmem:[%s1614_s10 + $0x88] sm:$0xff] %vm584_vm2, %v511_v43  ;;  %v634_v49 = vmax.f32 %v511_v43, 0.0 }
  0xea   : > { %585 = vst.msk [vmem:[%s1614_s10] sm:$0xff] %vm584_vm2, %v426_v46  ;;  %v617_v50 = vmax.f32 %v426_v46, 0.0  ;;  %601 = vst.msk [vmem:[%s1614_s10 + $0x80] sm:$0xff] %vm584_vm2, %v506_v47  ;;  %v633_v51 = vmax.f32 %v506_v47, 0.0  ;;  %v1401_v52 = vpop.f32.mrb[2].mxu0  ;;  %v1425_v53 = vpop.f32.mrb[2].mxu1 }
  0xeb   : > { %v767_v54 = vrot.slane %v618_v48, 2  ;;  %v812_v55 = vrot.slane %v618_v48, 1  ;;  %v775_v56 = vrot.slane %v634_v49, 2  ;;  %v820_v57 = vrot.slane %v634_v49, 1  ;;  %v435_v58 = vpop.f32.mrb[3].mxu0  ;;  %v515_v59 = vpop.f32.mrb[3].mxu1 }
  0xec   : > { %v662_v60 = vrot.slane %v617_v50, 1  ;;  %v707_v61 = vrot.slane %v617_v50, 2  ;;  %v670_v62 = vrot.slane %v633_v51, 1  ;;  %v715_v63 = vrot.slane %v633_v51, 2 }
  0xed   : > { %v842_v0 = vmax.f32 %v618_v48, %v812_v55  ;;  %v850_v1 = vmax.f32 %v634_v49, %v820_v57  ;;  %v441_v2 = vadd.f32 %v1401_v52, %v1607_v39  ;;  %v521_v3 = vadd.f32 %v1425_v53, %v1607_v39 }
  0xee   : > { %v692_v4 = vmax.f32 %v617_v50, %v662_v60  ;;  %v700_v5 = vmax.f32 %v633_v51, %v670_v62  ;;  %v436_v6 = vadd.f32 %v1607_v39, %v435_v58  ;;  %v516_v7 = vadd.f32 %v1607_v39, %v515_v59  ;;  %v1632_v8 = vpop.f32.mrb[4].mxu0  ;;  %v1634_v9 = vpop.f32.mrb[4].mxu1 }
  0xef   : > { %v857_v10 = vmax.f32 %v842_v0, %v767_v54  ;;  %v865_v11 = vmax.f32 %v850_v1, %v775_v56  ;;  %588 = vst.msk [vmem:[%s1614_s10 + $0x18] sm:$0xff] %vm584_vm2, %v441_v2  ;;  %v1638_v12 = vmax.f32 %v441_v2, 0.0  ;;  %604 = vst.msk [vmem:[%s1614_s10 + $0x98] sm:$0xff] %vm584_vm2, %v521_v3  ;;  %v1642_v13 = vmax.f32 %v521_v3, 0.0  ;;  %v1644_v14 = vpop.f32.mrb[5].mxu0  ;;  %v1646_v15 = vpop.f32.mrb[5].mxu1 }
  0xf0   : > { %v737_v16 = vmax.f32 %v692_v4, %v707_v61  ;;  %v797_v17 = vmax.f32 %v692_v4, %v767_v54  ;;  %v745_v18 = vmax.f32 %v700_v5, %v715_v63  ;;  %v805_v19 = vmax.f32 %v700_v5, %v775_v56  ;;  %587 = vst.msk [vmem:[%s1614_s10 + $0x10] sm:$0xff] %vm584_vm2, %v436_v6 }
  0xf1   : > { %603 = vst.msk [vmem:[%s1614_s10 + $0x90] sm:$0xff] %vm584_vm2, %v516_v7  ;;  %v1007_v20 = vrot.slane %v857_v10, 4  ;;  %v1037_v21 = vrot.slane %v857_v10, 5  ;;  %v1067_v22 = vrot.slane %v857_v10, 6  ;;  %v1015_v23 = vrot.slane %v865_v11, 4 }
  0xf2   : > { %v1045_v24 = vrot.slane %v865_v11, 5  ;;  %v1075_v25 = vrot.slane %v865_v11, 6  ;;  %v887_v26 = vrot.slane %v737_v16, 1  ;;  %v917_v27 = vrot.slane %v737_v16, 2  ;;  %v1652_v28 = vpop.f32.mrb[6].mxu0  ;;  %v1654_v29 = vpop.f32.mrb[6].mxu1 }
  0xf3   : > { %v962_v30 = vrot.slane %v797_v17, 3  ;;  %v895_v31 = vrot.slane %v745_v18, 1  ;;  %v925_v32 = vrot.slane %v745_v18, 2  ;;  %v970_v33 = vrot.slane %v805_v19, 3  ;;  %v1656_v34 = vpop.f32.mrb[7].mxu0  ;;  %v1658_v35 = vpop.f32.mrb[7].mxu1 }
  0xf4   : > { %v1098_v36 = vsel %vm1097_vm3, %v737_v16, %v887_v26  ;;  %v768_v37 = vrot.slane %v1638_v12, 2  ;;  %v813_v38 = vrot.slane %v1638_v12, 1  ;;  %v776_v40 = vrot.slane %v1642_v13, 2 }
  0xf5   : > { %v1114_v41 = vsel %vm1113_vm4, %v1098_v36, %v917_v27  ;;  %v1106_v42 = vsel %vm1097_vm3, %v745_v18, %v895_v31  ;;  %v821_v43 = vrot.slane %v1642_v13, 1  ;;  %v619_v44 = vmax.f32 %v436_v6, 0.0 }
  0xf6   : > { %v1130_v45 = vsel %vm1129_vm5, %v1114_v41, %v962_v30  ;;  %v1122_v46 = vsel %vm1113_vm4, %v1106_v42, %v925_v32  ;;  %v843_v47 = vmax.f32 %v1638_v12, %v813_v38  ;;  %v635_v48 = vmax.f32 %v516_v7, 0.0  ;;  %v1670_v49 = vpop.f32.mrb[8].mxu0  ;;  %v1672_v50 = vpop.f32.mrb[8].mxu1 }
  0xf7   : > { %v1145_v51 = vsel %vm355_vm0, %v1130_v45, %v1007_v20  ;;  %v1138_v52 = vsel %vm1129_vm5, %v1122_v46, %v970_v33  ;;  %v851_v53 = vmax.f32 %v1642_v13, %v821_v43  ;;  %v663_v54 = vrot.slane %v619_v44, 1  ;;  %v1677_v55 = vpop.f32.mrb[9].mxu0  ;;  %v1679_v56 = vpop.f32.mrb[9].mxu1 }
  0xf8   : > { %v1161_v57 = vsel %vm1160_vm6, %v1145_v51, %v1037_v21  ;;  %v1153_v58 = vsel %vm355_vm0, %v1138_v52, %v1015_v23  ;;  %v1683_v59 = vmax.f32 %v843_v47, %v768_v37  ;;  %v708_v60 = vrot.slane %v619_v44, 2 }
  0xf9   : > { %v1686_v61 = vsel %vm1176_vm7, %v1161_v57, %v1067_v22  ;;  %v1169_v62 = vsel %vm1160_vm6, %v1153_v58, %v1045_v24  ;;  %v1689_v63 = vmax.f32 %v851_v53, %v776_v40  ;;  %v693_v0 = vmax.f32 %v619_v44, %v663_v54 }
  0xfa   : > { %v1692_v1 = vsel %vm1176_vm7, %v1169_v62, %v1075_v25  ;;  %v1008_v2 = vrot.slane %v1683_v59, 4  ;;  %v1695_v3 = vpop.f32.mrb[10].mxu0  ;;  %v1697_v4 = vpop.f32.mrb[10].mxu1  ;;  %v1038_v5 = vrot.slane %v1683_v59, 5  ;;  %v1068_v6 = vrot.slane %v1683_v59, 6 }
  0xfb   : > { %v1016_v7 = vrot.slane %v1689_v63, 4  ;;  %v738_v10 = vmax.f32 %v693_v0, %v708_v60  ;;  %v1702_v11 = vpop.f32.mrb[11].mxu0  ;;  %v1704_v12 = vpop.f32.mrb[11].mxu1  ;;  %v798_v13 = vmax.f32 %v693_v0, %v768_v37  ;;  %v671_v16 = vrot.slane %v635_v48, 1 }
  0xfc   : > { %v716_v17 = vrot.slane %v635_v48, 2  ;;  %v451_v18 = vadd.f32 %v1632_v8, %v1607_v39  ;;  %v531_v21 = vadd.f32 %v1634_v9, %v1607_v39  ;;  %v446_v22 = vadd.f32 %v1607_v39, %v1644_v14 }
  0xfd   : > { %v888_v19 = vrot.slane %v738_v10, 1  ;;  %v918_v20 = vrot.slane %v738_v10, 2  ;;  %v963_v23 = vrot.slane %v798_v13, 3  ;;  %v701_v24 = vmax.f32 %v635_v48, %v671_v16 }
  0xfe   : > { %590 = vst.msk [vmem:[%s1614_s10 + $0x28] sm:$0xff] %vm584_vm2, %v451_v18  ;;  %v622_v25 = vmax.f32 %v451_v18, 0.0  ;;  %v526_v26 = vadd.f32 %v1607_v39, %v1646_v15  ;;  %v1716_v27 = vpop.f32.mrb[12].mxu0  ;;  %v1718_v8 = vpop.f32.mrb[12].mxu1  ;;  %606 = vst.msk [vmem:[%s1614_s10 + $0xa8] sm:$0xff] %vm584_vm2, %v531_v21  ;;  %v1723_v9 = vmax.f32 %v531_v21, 0.0  ;;  %v461_v31 = vadd.f32 %v1652_v28, %v1607_v39 }
  0xff   : > { %v1099_v30 = vsel %vm1097_vm3, %v738_v10, %v888_v19  ;;  %589 = vst.msk [vmem:[%s1614_s10 + $0x20] sm:$0xff] %vm584_vm2, %v446_v22  ;;  %v621_v14 = vmax.f32 %v446_v22, 0.0  ;;  %v1729_v32 = vpop.f32.mrb[13].mxu0  ;;  %v1731_v15 = vpop.f32.mrb[13].mxu1  ;;  %v746_v36 = vmax.f32 %v701_v24, %v716_v17  ;;  %v806_v37 = vmax.f32 %v701_v24, %v776_v40 }
 0x100   : > { %v1115_v33 = vsel %vm1113_vm4, %v1099_v30, %v918_v20  ;;  %v769_v38 = vrot.slane %v622_v25, 2  ;;  %605 = vst.msk [vmem:[%s1614_s10 + $0xa0] sm:$0xff] %vm584_vm2, %v526_v26  ;;  %v814_v42 = vrot.slane %v622_v25, 1  ;;  %v777_v43 = vrot.slane %v1723_v9, 2  ;;  %592 = vst.msk [vmem:[%s1614_s10 + $0x38] sm:$0xff] %vm584_vm2, %v461_v31 }
 0x101   : > { %v1131_v41 = vsel %vm1129_vm5, %v1115_v33, %v963_v23  ;;  %v822_v44 = vrot.slane %v1723_v9, 1  ;;  %v896_v45 = vrot.slane %v746_v36, 1  ;;  %v926_v46 = vrot.slane %v746_v36, 2 }
 0x102   : > { %v1146_v28 = vsel %vm355_vm0, %v1131_v41, %v1008_v2  ;;  %v971_v47 = vrot.slane %v806_v37, 3  ;;  %v1742_v48 = vpop.f32.mrb[14].mxu0  ;;  %v1744_v40 = vpop.f32.mrb[14].mxu1  ;;  %v844_v52 = vmax.f32 %v622_v25, %v814_v42  ;;  %v664_v54 = vrot.slane %v621_v14, 1 }
 0x103   : > { %v1162_v51 = vsel %vm1160_vm6, %v1146_v28, %v1038_v5  ;;  %v852_v53 = vmax.f32 %v1723_v9, %v822_v44  ;;  %v1748_v57 = vpop.f32.mrb[15].mxu0  ;;  %v1750_v58 = vpop.f32.mrb[15].mxu1  ;;  %v1046_v59 = vrot.slane %v1689_v63, 5  ;;  %v1107_v62 = vsel %vm1097_vm3, %v746_v36, %v896_v45 }
 0x104   : > { %v1754_v60 = vsel %vm1176_vm7, %v1162_v51, %v1068_v6  ;;  %v637_v0 = vmax.f32 %v526_v26, 0.0  ;;  %v1123_v5 = vsel %vm1113_vm4, %v1107_v62, %v926_v46  ;;  %v859_v10 = vmax.f32 %v844_v52, %v769_v38 }
 0x105   : > { %v1192_v2 = vmax.f32 %v1686_v61, %v1754_v60  ;;  %v1760_v13 = vmax.f32 %v852_v53, %v777_v43  ;;  %v1076_v16 = vrot.slane %v1689_v63, 6  ;;  %v1139_v17 = vsel %vm1129_vm5, %v1123_v5, %v971_v47 }
 0x106   : > { %v694_v6 = vmax.f32 %v621_v14, %v664_v54  ;;  %v672_v18 = vrot.slane %v637_v0, 1  ;;  %v1154_v19 = vsel %vm355_vm0, %v1139_v17, %v1016_v7  ;;  %v1009_v20 = vrot.slane %v859_v10, 4 }
 0x107   : > { %v709_v21 = vrot.slane %v621_v14, 2  ;;  %v717_v22 = vrot.slane %v637_v0, 2  ;;  %v1170_v23 = vsel %vm1160_vm6, %v1154_v19, %v1046_v59  ;;  %v1039_v24 = vrot.slane %v859_v10, 5 }
 0x108   : > { %v1069_v25 = vrot.slane %v859_v10, 6  ;;  %v1017_v26 = vrot.slane %v1760_v13, 4  ;;  %v1186_v30 = vsel %vm1176_vm7, %v1170_v23, %v1076_v16  ;;  %v799_v33 = vmax.f32 %v694_v6, %v769_v38 }
 0x109   : > { %v739_v9 = vmax.f32 %v694_v6, %v709_v21  ;;  %v702_v36 = vmax.f32 %v637_v0, %v672_v18  ;;  %v1200_v63 = vmax.f32 %v1692_v1, %v1186_v30  ;;  %v624_v7 = vmax.f32 %v461_v31, 0.0 }
 0x10a   : > { %v541_v14 = vadd.f32 %v1654_v29, %v1607_v39  ;;  %v456_v37 = vadd.f32 %v1607_v39, %v1656_v34  ;;  %v1047_v41 = vrot.slane %v1760_v13, 5  ;;  %v964_v28 = vrot.slane %v799_v33, 3 }
 0x10b   : > { %v889_v42 = vrot.slane %v739_v9, 1  ;;  %v919_v38 = vrot.slane %v739_v9, 2  ;;  %v747_v44 = vmax.f32 %v702_v36, %v717_v22  ;;  %v807_v45 = vmax.f32 %v702_v36, %v777_v43 }
 0x10c   : > { %v815_v46 = vrot.slane %v624_v7, 1  ;;  %608 = vst.msk [vmem:[%s1614_s10 + $0xb8] sm:$0xff] %vm584_vm2, %v541_v14  ;;  %v1784_v47 = vmax.f32 %v541_v14, 0.0  ;;  %591 = vst.msk [vmem:[%s1614_s10 + $0x30] sm:$0xff] %vm584_vm2, %v456_v37  ;;  %v623_v52 = vmax.f32 %v456_v37, 0.0  ;;  %v770_v54 = vrot.slane %v624_v7, 2 }
 0x10d   : > { %v1100_v29 = vsel %vm1097_vm3, %v739_v9, %v889_v42  ;;  %v897_v31 = vrot.slane %v747_v44, 1  ;;  %v927_v51 = vrot.slane %v747_v44, 2  ;;  %v972_v53 = vrot.slane %v807_v45, 3 }
 0x10e   : > { %v1116_v34 = vsel %vm1113_vm4, %v1100_v29, %v919_v38  ;;  %v845_v59 = vmax.f32 %v624_v7, %v815_v46  ;;  %v823_v0 = vrot.slane %v1784_v47, 1  ;;  %v665_v5 = vrot.slane %v623_v52, 1 }
 0x10f   : > { %v1132_v43 = vsel %vm1129_vm5, %v1116_v34, %v964_v28  ;;  %v1108_v62 = vsel %vm1097_vm3, %v747_v44, %v897_v31  ;;  %v778_v6 = vrot.slane %v1784_v47, 2  ;;  %v1077_v23 = vrot.slane %v1760_v13, 6 }
 0x110   : > { %v1147_v10 = vsel %vm355_vm0, %v1132_v43, %v1009_v20  ;;  %v1124_v16 = vsel %vm1113_vm4, %v1108_v62, %v927_v51  ;;  %v860_v17 = vmax.f32 %v845_v59, %v770_v54  ;;  %v853_v21 = vmax.f32 %v1784_v47, %v823_v0 }
 0x111   : > { %v1163_v18 = vsel %vm1160_vm6, %v1147_v10, %v1039_v24  ;;  %v1140_v19 = vsel %vm1129_vm5, %v1124_v16, %v972_v53  ;;  %v695_v22 = vmax.f32 %v623_v52, %v665_v5  ;;  %v710_v9 = vrot.slane %v623_v52, 2 }
 0x112   : > { %v1807_v20 = vsel %vm1176_vm7, %v1163_v18, %v1069_v25  ;;  %v1155_v30 = vsel %vm355_vm0, %v1140_v19, %v1017_v26  ;;  %v1010_v33 = vrot.slane %v860_v17, 4  ;;  %v536_v25 = vadd.f32 %v1607_v39, %v1658_v35 }
 0x113   : > { %v1193_v24 = vmax.f32 %v1192_v2, %v1807_v20  ;;  %v1171_v13 = vsel %vm1160_vm6, %v1155_v30, %v1047_v41  ;;  %v740_v7 = vmax.f32 %v695_v22, %v710_v9  ;;  %v800_v14 = vmax.f32 %v695_v22, %v770_v54 }
 0x114   : > { %v1816_v36 = vsel %vm1176_vm7, %v1171_v13, %v1077_v23  ;;  %v1040_v37 = vrot.slane %v860_v17, 5  ;;  %v1070_v61 = vrot.slane %v860_v17, 6  ;;  %v1823_v60 = vmax.f32 %v853_v21, %v778_v6  ;;  %607 = vst.msk [vmem:[%s1614_s10 + $0xb0] sm:$0xff] %vm584_vm2, %v536_v25 }
 0x115   : > { %1207 = vst.msk [vmem:[%s1804_s14] sm:$0x7f] %vm1206_vm8, %v1193_v24  ;;  %v1201_v26 = vmax.f32 %v1200_v63, %v1816_v36  ;;  %v890_v2 = vrot.slane %v740_v7, 1  ;;  %v920_v41 = vrot.slane %v740_v7, 2  ;;  %v965_v42 = vrot.slane %v800_v14, 3 }
 0x116   : > { %v639_v38 = vmax.f32 %v536_v25, 0.0  ;;  %v471_v35 = vadd.f32 %v1670_v49, %v1607_v39  ;;  %v551_v63 = vadd.f32 %v1672_v50, %v1607_v39  ;;  %v466_v44 = vadd.f32 %v1607_v39, %v1677_v55 }
 0x117   : > { %1211 = vst.msk [vmem:[%s1804_s14 + $0x20] sm:$0x7f] %vm1206_vm8, %v1201_v26  ;;  %v546_v28 = vadd.f32 %v1607_v39, %v1679_v56  ;;  %v1101_v45 = vsel %vm1097_vm3, %v740_v7, %v890_v2  ;;  %v481_v29 = vadd.f32 %v1695_v3, %v1607_v39  ;;  %v1018_v56 = vrot.slane %v1823_v60, 4 }
 0x118   : > { %v673_v46 = vrot.slane %v639_v38, 1  ;;  %v718_v47 = vrot.slane %v639_v38, 2  ;;  %v1117_v31 = vsel %vm1113_vm4, %v1101_v45, %v920_v41  ;;  %594 = vst.msk [vmem:[%s1614_s10 + $0x48] sm:$0xff] %vm584_vm2, %v471_v35  ;;  %v626_v49 = vmax.f32 %v471_v35, 0.0  ;;  %610 = vst.msk [vmem:[%s1614_s10 + $0xc8] sm:$0xff] %vm584_vm2, %v551_v63 }
 0x119   : > { %v642_v50 = vmax.f32 %v551_v63, 0.0  ;;  %593 = vst.msk [vmem:[%s1614_s10 + $0x40] sm:$0xff] %vm584_vm2, %v466_v44  ;;  %v625_v55 = vmax.f32 %v466_v44, 0.0  ;;  %609 = vst.msk [vmem:[%s1614_s10 + $0xc0] sm:$0xff] %vm584_vm2, %v546_v28  ;;  %v1133_v51 = vsel %vm1129_vm5, %v1117_v31, %v965_v42  ;;  %v641_v34 = vmax.f32 %v546_v28, 0.0 }
 0x11a   : > { %v703_v52 = vmax.f32 %v639_v38, %v673_v46  ;;  %596 = vst.msk [vmem:[%s1614_s10 + $0x58] sm:$0xff] %vm584_vm2, %v481_v29  ;;  %v1148_v3 = vsel %vm355_vm0, %v1133_v51, %v1010_v33  ;;  %v771_v53 = vrot.slane %v626_v49, 2  ;;  %v816_v54 = vrot.slane %v626_v49, 1 }
 0x11b   : > { %v1854_v59 = vmax.f32 %v481_v29, 0.0  ;;  %v1164_v43 = vsel %vm1160_vm6, %v1148_v3, %v1040_v37  ;;  %v824_v5 = vrot.slane %v642_v50, 1  ;;  %v779_v17 = vrot.slane %v642_v50, 2 }
 0x11c   : > { %v748_v62 = vmax.f32 %v703_v52, %v718_v47  ;;  %v808_v0 = vmax.f32 %v703_v52, %v778_v6  ;;  %v1858_v10 = vsel %vm1176_vm7, %v1164_v43, %v1070_v61  ;;  %v846_v16 = vmax.f32 %v626_v49, %v816_v54 }
 0x11d   : > { %v666_v18 = vrot.slane %v625_v55, 1  ;;  %v1194_v19 = vmax.f32 %v1807_v20, %v1858_v10  ;;  %v854_v9 = vmax.f32 %v642_v50, %v824_v5  ;;  %v674_v13 = vrot.slane %v641_v34, 1 }
 0x11e   : > { %v898_v21 = vrot.slane %v748_v62, 1  ;;  %v928_v22 = vrot.slane %v748_v62, 2  ;;  %v973_v23 = vrot.slane %v808_v0, 3  ;;  %v861_v30 = vmax.f32 %v846_v16, %v771_v53 }
 0x11f   : > { %v696_v24 = vmax.f32 %v625_v55, %v666_v18  ;;  %v1048_v33 = vrot.slane %v1823_v60, 5  ;;  %v711_v7 = vrot.slane %v625_v55, 2  ;;  %v817_v14 = vrot.slane %v1854_v59, 1 }
 0x120   : > { %v1109_v6 = vsel %vm1097_vm3, %v748_v62, %v898_v21  ;;  %v1078_v25 = vrot.slane %v1823_v60, 6  ;;  %v719_v37 = vrot.slane %v641_v34, 2  ;;  %v772_v61 = vrot.slane %v1854_v59, 2 }
 0x121   : > { %v1125_v26 = vsel %vm1113_vm4, %v1109_v6, %v928_v22  ;;  %v869_v41 = vmax.f32 %v854_v9, %v779_v17  ;;  %v741_v42 = vmax.f32 %v696_v24, %v711_v7  ;;  %v801_v38 = vmax.f32 %v696_v24, %v771_v53 }
 0x122   : > { %v1141_v2 = vsel %vm1129_vm5, %v1125_v26, %v973_v23  ;;  %v1011_v63 = vrot.slane %v861_v30, 4  ;;  %v704_v44 = vmax.f32 %v641_v34, %v674_v13  ;;  %v561_v28 = vadd.f32 %v1697_v4, %v1607_v39 }
 0x123   : > { %v1156_v35 = vsel %vm355_vm0, %v1141_v2, %v1018_v56  ;;  %v1041_v45 = vrot.slane %v861_v30, 5  ;;  %v1071_v46 = vrot.slane %v861_v30, 6  ;;  %v847_v47 = vmax.f32 %v1854_v59, %v817_v14 }
 0x124   : > { %v1172_v60 = vsel %vm1160_vm6, %v1156_v35, %v1048_v33  ;;  %v1019_v31 = vrot.slane %v869_v41, 4  ;;  %v891_v49 = vrot.slane %v741_v42, 1  ;;  %v921_v50 = vrot.slane %v741_v42, 2  ;;  %612 = vst.msk [vmem:[%s1614_s10 + $0xd8] sm:$0xff] %vm584_vm2, %v561_v28 }
 0x125   : > { %v1188_v29 = vsel %vm1176_vm7, %v1172_v60, %v1078_v25  ;;  %v966_v56 = vrot.slane %v801_v38, 3  ;;  %v749_v51 = vmax.f32 %v704_v44, %v719_v37  ;;  %v809_v4 = vmax.f32 %v704_v44, %v779_v17 }
 0x126   : > { %v1202_v55 = vmax.f32 %v1816_v36, %v1188_v29  ;;  %v1102_v52 = vsel %vm1097_vm3, %v741_v42, %v891_v49  ;;  %v644_v34 = vmax.f32 %v561_v28, 0.0  ;;  %v476_v3 = vadd.f32 %v1607_v39, %v1702_v11 }
 0x127   : > { %v556_v53 = vadd.f32 %v1607_v39, %v1704_v12  ;;  %v1118_v54 = vsel %vm1113_vm4, %v1102_v52, %v921_v50  ;;  %v899_v43 = vrot.slane %v749_v51, 1  ;;  %v929_v62 = vrot.slane %v749_v51, 2 }
 0x128   : > { %v974_v0 = vrot.slane %v809_v4, 3  ;;  %v1049_v36 = vrot.slane %v869_v41, 5  ;;  %v1079_v5 = vrot.slane %v869_v41, 6  ;;  %v1134_v16 = vsel %vm1129_vm5, %v1118_v54, %v966_v56  ;;  %595 = vst.msk [vmem:[%s1614_s10 + $0x50] sm:$0xff] %vm584_vm2, %v476_v3 }
 0x129   : > { %v1887_v17 = vmax.f32 %v847_v47, %v772_v61  ;;  %611 = vst.msk [vmem:[%s1614_s10 + $0xd0] sm:$0xff] %vm584_vm2, %v556_v53  ;;  %v1149_v11 = vsel %vm355_vm0, %v1134_v16, %v1011_v63  ;;  %v1110_v12 = vsel %vm1097_vm3, %v749_v51, %v899_v43  ;;  %v780_v18 = vrot.slane %v644_v34, 2 }
 0x12a   : > { %v825_v21 = vrot.slane %v644_v34, 1  ;;  %v1165_v22 = vsel %vm1160_vm6, %v1149_v11, %v1041_v45  ;;  %v1126_v23 = vsel %vm1113_vm4, %v1110_v12, %v929_v62  ;;  %v627_v30 = vmax.f32 %v476_v3, 0.0 }
 0x12b   : > { %v643_v9 = vmax.f32 %v556_v53, 0.0  ;;  %v1898_v24 = vsel %vm1176_vm7, %v1165_v22, %v1071_v46  ;;  %v1142_v13 = vsel %vm1129_vm5, %v1126_v23, %v974_v0  ;;  %v491_v6 = vadd.f32 %v1716_v27, %v1607_v39 }
 0x12c   : > { %v855_v33 = vmax.f32 %v644_v34, %v825_v21  ;;  %v1195_v7 = vmax.f32 %v1194_v19, %v1898_v24  ;;  %v1157_v14 = vsel %vm355_vm0, %v1142_v13, %v1019_v31  ;;  %v667_v25 = vrot.slane %v627_v30, 1 }
 0x12d   : > { %v712_v26 = vrot.slane %v627_v30, 2  ;;  %v1173_v37 = vsel %vm1160_vm6, %v1157_v14, %v1049_v36  ;;  %v675_v41 = vrot.slane %v643_v9, 1  ;;  %v720_v42 = vrot.slane %v643_v9, 2  ;;  %598 = vst.msk [vmem:[%s1614_s10 + $0x68] sm:$0xff] %vm584_vm2, %v491_v6 }
 0x12e   : > { %v870_v2 = vmax.f32 %v855_v33, %v780_v18  ;;  %1208 = vst.msk [vmem:[%s1804_s14 + $0x8] sm:$0x7f] %vm1206_vm8, %v1195_v7  ;;  %v1914_v27 = vsel %vm1176_vm7, %v1173_v37, %v1079_v5  ;;  %v697_v20 = vmax.f32 %v627_v30, %v667_v25  ;;  %v630_v10 = vmax.f32 %v491_v6, 0.0 }
 0x12f   : > { %v571_v19 = vadd.f32 %v1718_v8, %v1607_v39  ;;  %v1203_v38 = vmax.f32 %v1202_v55, %v1914_v27  ;;  %v1012_v35 = vrot.slane %v1887_v17, 4  ;;  %v1042_v63 = vrot.slane %v1887_v17, 5 }
 0x130   : > { %v1072_v44 = vrot.slane %v1887_v17, 6  ;;  %v742_v28 = vmax.f32 %v697_v20, %v712_v26  ;;  %v802_v60 = vmax.f32 %v697_v20, %v772_v61  ;;  %v705_v45 = vmax.f32 %v643_v9, %v675_v41 }
 0x131   : > { %614 = vst.msk [vmem:[%s1614_s10 + $0xe8] sm:$0xff] %vm584_vm2, %v571_v19  ;;  %v818_v8 = vrot.slane %v630_v10, 1  ;;  %v1928_v46 = vmax.f32 %v571_v19, 0.0  ;;  %v486_v47 = vadd.f32 %v1607_v39, %v1729_v32  ;;  %v566_v29 = vadd.f32 %v1607_v39, %v1731_v15 }
 0x132   : > { %1212 = vst.msk [vmem:[%s1804_s14 + $0x28] sm:$0x7f] %vm1206_vm8, %v1203_v38  ;;  %v1020_v31 = vrot.slane %v870_v2, 4  ;;  %v892_v49 = vrot.slane %v742_v28, 1  ;;  %v922_v59 = vrot.slane %v742_v28, 2  ;;  %v750_v61 = vmax.f32 %v705_v45, %v720_v42 }
 0x133   : > { %v967_v50 = vrot.slane %v802_v60, 3  ;;  %v810_v55 = vmax.f32 %v705_v45, %v780_v18  ;;  %v848_v56 = vmax.f32 %v630_v10, %v818_v8  ;;  %v826_v51 = vrot.slane %v1928_v46, 1  ;;  %597 = vst.msk [vmem:[%s1614_s10 + $0x60] sm:$0xff] %vm584_vm2, %v486_v47  ;;  %613 = vst.msk [vmem:[%s1614_s10 + $0xe0] sm:$0xff] %vm584_vm2, %v566_v29 }
 0x134   : > { %v1103_v4 = vsel %vm1097_vm3, %v742_v28, %v892_v49  ;;  %v900_v52 = vrot.slane %v750_v61, 1  ;;  %v930_v32 = vrot.slane %v750_v61, 2  ;;  %v629_v34 = vmax.f32 %v486_v47, 0.0 }
 0x135   : > { %v1050_v3 = vrot.slane %v870_v2, 5  ;;  %v1119_v15 = vsel %vm1113_vm4, %v1103_v4, %v922_v59  ;;  %v975_v53 = vrot.slane %v810_v55, 3  ;;  %v773_v54 = vrot.slane %v630_v10, 2 }
 0x136   : > { %v1080_v43 = vrot.slane %v870_v2, 6  ;;  %v1135_v62 = vsel %vm1129_vm5, %v1119_v15, %v967_v50  ;;  %v1111_v0 = vsel %vm1097_vm3, %v750_v61, %v900_v52  ;;  %v668_v36 = vrot.slane %v629_v34, 1 }
 0x137   : > { %v1150_v5 = vsel %vm355_vm0, %v1135_v62, %v1012_v35  ;;  %v1127_v16 = vsel %vm1113_vm4, %v1111_v0, %v930_v32  ;;  %v863_v17 = vmax.f32 %v848_v56, %v773_v54  ;;  %v781_v11 = vrot.slane %v1928_v46, 2 }
 0x138   : > { %v1166_v12 = vsel %vm1160_vm6, %v1150_v5, %v1042_v63  ;;  %v1143_v18 = vsel %vm1129_vm5, %v1127_v16, %v975_v53  ;;  %v856_v21 = vmax.f32 %v1928_v46, %v826_v51  ;;  %v713_v22 = vrot.slane %v629_v34, 2 }
 0x139   : > { %v1182_v23 = vsel %vm1176_vm7, %v1166_v12, %v1072_v44  ;;  %v1158_v30 = vsel %vm355_vm0, %v1143_v18, %v1020_v31  ;;  %v698_v9 = vmax.f32 %v629_v34, %v668_v36  ;;  %v645_v13 = vmax.f32 %v566_v29, 0.0 }
 0x13a   : > { %v1196_v33 = vmax.f32 %v1898_v24, %v1182_v23  ;;  %v1174_v6 = vsel %vm1160_vm6, %v1158_v30, %v1050_v3  ;;  %v1013_v14 = vrot.slane %v863_v17, 4  ;;  %v501_v42 = vadd.f32 %v1742_v48, %v1607_v39 }
 0x13b   : > { %v1190_v7 = vsel %vm1176_vm7, %v1174_v6, %v1080_v43  ;;  %v743_v25 = vmax.f32 %v698_v9, %v713_v22  ;;  %v803_v26 = vmax.f32 %v698_v9, %v773_v54  ;;  %v676_v2 = vrot.slane %v645_v13, 1 }
 0x13c   : > { %v1204_v37 = vmax.f32 %v1914_v27, %v1190_v7  ;;  %v721_v41 = vrot.slane %v645_v13, 2  ;;  %v871_v20 = vmax.f32 %v856_v21, %v781_v11  ;;  %v496_v24 = vadd.f32 %v1607_v39, %v1748_v57  ;;  %600 = vst.msk [vmem:[%s1614_s10 + $0x78] sm:$0xff] %vm584_vm2, %v501_v42 }
 0x13d   : > { %v893_v10 = vrot.slane %v743_v25, 1  ;;  %v923_v19 = vrot.slane %v743_v25, 2  ;;  %v706_v38 = vmax.f32 %v645_v13, %v676_v2  ;;  %v632_v35 = vmax.f32 %v501_v42, 0.0 }
 0x13e   : > { %v581_v27 = vadd.f32 %v1744_v40, %v1607_v39  ;;  %v576_v63 = vadd.f32 %v1607_v39, %v1750_v58  ;;  %v1043_v44 = vrot.slane %v863_v17, 5  ;;  %v968_v48 = vrot.slane %v803_v26, 3  ;;  %599 = vst.msk [vmem:[%s1614_s10 + $0x70] sm:$0xff] %vm584_vm2, %v496_v24 }
 0x13f   : > { %v1104_v28 = vsel %vm1097_vm3, %v743_v25, %v893_v10  ;;  %v631_v60 = vmax.f32 %v496_v24, 0.0  ;;  %v1073_v45 = vrot.slane %v863_v17, 6  ;;  %v751_v8 = vmax.f32 %v706_v38, %v721_v41 }
 0x140   : > { %v1120_v57 = vsel %vm1113_vm4, %v1104_v28, %v923_v19  ;;  %v811_v46 = vmax.f32 %v706_v38, %v781_v11  ;;  %616 = vst.msk [vmem:[%s1614_s10 + $0xf8] sm:$0xff] %vm584_vm2, %v581_v27  ;;  %615 = vst.msk [vmem:[%s1614_s10 + $0xf0] sm:$0xff] %vm584_vm2, %v576_v63  ;;  %v1021_v40 = vrot.slane %v871_v20, 4  ;;  %v819_v39 = vrot.slane %v632_v35, 1 }
 0x141   : > { %v1136_v47 = vsel %vm1129_vm5, %v1120_v57, %v968_v48  ;;  %v669_v58 = vrot.slane %v631_v60, 1  ;;  %v901_v31 = vrot.slane %v751_v8, 1  ;;  %v931_v49 = vrot.slane %v751_v8, 2 }
 0x142   : > { %v1151_v29 = vsel %vm355_vm0, %v1136_v47, %v1013_v14  ;;  %v976_v59 = vrot.slane %v811_v46, 3  ;;  %v849_v50 = vmax.f32 %v632_v35, %v819_v39  ;;  %v714_v56 = vrot.slane %v631_v60, 2 }
 0x143   : > { %v1167_v61 = vsel %vm1160_vm6, %v1151_v29, %v1043_v44  ;;  %v699_v55 = vmax.f32 %v631_v60, %v669_v58  ;;  %v1051_v51 = vrot.slane %v871_v20, 5  ;;  %v1112_v52 = vsel %vm1097_vm3, %v751_v8, %v901_v31 }
 0x144   : > { %v1183_v4 = vsel %vm1176_vm7, %v1167_v61, %v1073_v45  ;;  %v774_v32 = vrot.slane %v632_v35, 2  ;;  %v1128_v3 = vsel %vm1113_vm4, %v1112_v52, %v931_v49  ;;  %v1081_v43 = vrot.slane %v871_v20, 6 }
 0x145   : > { %v1197_v34 = vmax.f32 %v1196_v33, %v1183_v4  ;;  %v744_v15 = vmax.f32 %v699_v55, %v714_v56  ;;  %v1144_v53 = vsel %vm1129_vm5, %v1128_v3, %v976_v59 }
 0x146   : > { %v804_v54 = vmax.f32 %v699_v55, %v774_v32  ;;  %v1159_v62 = vsel %vm355_vm0, %v1144_v53, %v1021_v40  ;;  %v864_v0 = vmax.f32 %v849_v50, %v774_v32 }
 0x147   : > { %1209 = vst.msk [vmem:[%s1804_s14 + $0x10] sm:$0x7f] %vm1206_vm8, %v1197_v34  ;;  %v1175_v36 = vsel %vm1160_vm6, %v1159_v62, %v1051_v51  ;;  %v894_v5 = vrot.slane %v744_v15, 1  ;;  %v924_v16 = vrot.slane %v744_v15, 2 }
 0x148   : > { %v1191_v17 = vsel %vm1176_vm7, %v1175_v36, %v1081_v43  ;;  %v969_v12 = vrot.slane %v804_v54, 3  ;;  %v1014_v21 = vrot.slane %v864_v0, 4  ;;  %v1044_v23 = vrot.slane %v864_v0, 5 }
 0x149   : > { %v1205_v11 = vmax.f32 %v1204_v37, %v1191_v17  ;;  %v1105_v18 = vsel %vm1097_vm3, %v744_v15, %v894_v5  ;;  %v1074_v9 = vrot.slane %v864_v0, 6 }
 0x14a   : > { %v1121_v22 = vsel %vm1113_vm4, %v1105_v18, %v924_v16 }
 0x14b   : > { %1213 = vst.msk [vmem:[%s1804_s14 + $0x30] sm:$0x7f] %vm1206_vm8, %v1205_v11  ;;  %v1137_v30 = vsel %vm1129_vm5, %v1121_v22, %v969_v12 }
 0x14c   : > { %v1152_v13 = vsel %vm355_vm0, %v1137_v30, %v1014_v21 }
 0x14d   : > { %v1168_v33 = vsel %vm1160_vm6, %v1152_v13, %v1044_v23 }
 0x14e   : > { %v1184_v6 = vsel %vm1176_vm7, %v1168_v33, %v1074_v9 }
 0x14f   : > { %v1198_v7 = vmax.f32 %v1183_v4, %v1184_v6 }
 0x151   : > { %v1199_v14 = vmax.f32 %v1198_v7, %v1692_v1 }
 0x153   : > { %1210 = vst.msk [vmem:[%s1804_s14 + $0x18] sm:$0x7f] %vm1206_vm8, %v1199_v14 }
 0x154 PF: > { %s15_s15 = sadd.s32 1, %s1473_s15  }
 0x155   : > { %p12_p5 = scmp.ge.s32.totalorder %s15_s15, 4  }
 0x157   :  { %14 = sbr.rel (!%p12_p5) target bundleno = 1 (0x1), region = 74 }

// kernel: conv_rnn_forward.3
= control target key start
LH: loop header
LB: loop body
LE: loop exit
PB: predicated region body
PF: predicated region fallthrough
CT: control target
= control target key end

     0   :  { %vm489_vm0 = vcmask 261120   ;;  %s2245_s1 = inlined_call_operand.vmem [shape: f32[128,32], index: 1, kind: input, shape index: {}]   ;;  %s2246_s4 = inlined_call_operand.vmem [shape: f32[2,32], index: 4, kind: output, shape index: {}]   ;;  %s2247_s0 = inlined_call_operand.vmem [shape: f32[512,128], index: 0, kind: input, shape index: {}]   ;;  %s2248_s3 = inlined_call_operand.vmem [shape: f32[32,32], index: 3, kind: input, shape index: {}]   ;;  %s2249_s2 = inlined_call_operand.vmem [shape: f32[1,32], index: 2, kind: input, shape index: {}]  }
   0x1   :  { %v81_v0 = vld [vmem:[%s2245_s1] sm:$0xff]  ;;  %v82_v1 = vld [vmem:[%s2245_s1 + $0x8] sm:$0xff]  ;;  %v83_v2 = vld [vmem:[%s2245_s1 + $0x10] sm:$0xff] }
   0x2   :  { %v1586_v3 = vpack.c.bf16 %v82_v1, %v81_v0  ;;  %v84_v4 = vld [vmem:[%s2245_s1 + $0x18] sm:$0xff]  ;;  %v85_v6 = vld [vmem:[%s2245_s1 + $0x20] sm:$0xff]  ;;  %v86_v7 = vld [vmem:[%s2245_s1 + $0x28] sm:$0xff] }
   0x3   :  { %v1590_v5 = vpack.c.bf16 %v84_v4, %v83_v2  ;;  %v1594_v8 = vpack.c.bf16 %v86_v7, %v85_v6  ;;  %v17_v9 = vld [vmem:[%s2247_s0] sm:$0xff]  ;;  %v87_v11 = vld [vmem:[%s2245_s1 + $0x30] sm:$0xff]  ;;  %v88_v12 = vld [vmem:[%s2245_s1 + $0x38] sm:$0xff] }
   0x4   :  { %1587 = vmatprep.subr.bf16.mxu0 %v1586_v3  ;;  %1666 = vmatprep.subr.bf16.mxu1 %v1586_v3  ;;  %v49_v10 = vld [vmem:[%s2247_s0 + $0x100] sm:$0xff]  ;;  %v1598_v13 = vpack.c.bf16 %v88_v12, %v87_v11  ;;  %v90_v15 = vld [vmem:[%s2245_s1 + $0x48] sm:$0xff]  ;;  %v91_v17 = vld [vmem:[%s2245_s1 + $0x50] sm:$0xff] }
   0x5   :  { %1589 = vmatpush3.bf16.msra.mxu0 %v1586_v3  ;;  %1674 = vmatpush3.bf16.msra.mxu1 %v1586_v3  ;;  %v89_v14 = vld [vmem:[%s2245_s1 + $0x40] sm:$0xff]  ;;  %v92_v18 = vld [vmem:[%s2245_s1 + $0x58] sm:$0xff]  ;;  %v94_v21 = vld [vmem:[%s2245_s1 + $0x68] sm:$0xff] }
   0x6   :  { %1591 = vmatprep.subr.bf16.mxu0 %v1590_v5  ;;  %1667 = vmatprep.subr.bf16.mxu1 %v1590_v5  ;;  %v1602_v16 = vpack.c.bf16 %v90_v15, %v89_v14  ;;  %v1606_v19 = vpack.c.bf16 %v92_v18, %v91_v17  ;;  %v93_v20 = vld [vmem:[%s2245_s1 + $0x60] sm:$0xff]  ;;  %v95_v23 = vld [vmem:[%s2245_s1 + $0x70] sm:$0xff]  ;;  %v96_v24 = vld [vmem:[%s2245_s1 + $0x78] sm:$0xff] }
   0x7   :  { %1402 = vmatprep.mubr.f32.mxu0 %v17_v9  ;;  %1450 = vmatprep.mubr.f32.mxu1 %v49_v10  ;;  %v1610_v22 = vpack.c.bf16 %v94_v21, %v93_v20  ;;  %v1614_v25 = vpack.c.bf16 %v96_v24, %v95_v23  ;;  %v18_v26 = vld [vmem:[%s2247_s0 + $0x8] sm:$0xff]  ;;  %v19_v28 = vld [vmem:[%s2247_s0 + $0x10] sm:$0xff]  ;;  %v20_v30 = vld [vmem:[%s2247_s0 + $0x18] sm:$0xff] }
   0x8   :  { %v50_v27 = vld [vmem:[%s2247_s0 + $0x108] sm:$0xff]  ;;  %v51_v29 = vld [vmem:[%s2247_s0 + $0x110] sm:$0xff]  ;;  %v52_v31 = vld [vmem:[%s2247_s0 + $0x118] sm:$0xff] }
   0x9   :  { %1593 = vmatpush3.bf16.msra.mxu0 %v1590_v5  ;;  %1675 = vmatpush3.bf16.msra.mxu1 %v1590_v5  ;;  %v21_v32 = vld [vmem:[%s2247_s0 + $0x20] sm:$0xff]  ;;  %v22_v34 = vld [vmem:[%s2247_s0 + $0x28] sm:$0xff]  ;;  %v23_v36 = vld [vmem:[%s2247_s0 + $0x30] sm:$0xff] }
   0xa   :  { %1595 = vmatprep.subr.bf16.mxu0 %v1594_v8  ;;  %1668 = vmatprep.subr.bf16.mxu1 %v1594_v8  ;;  %v53_v33 = vld [vmem:[%s2247_s0 + $0x120] sm:$0xff]  ;;  %v54_v35 = vld [vmem:[%s2247_s0 + $0x128] sm:$0xff]  ;;  %v55_v37 = vld [vmem:[%s2247_s0 + $0x130] sm:$0xff] }
   0xb   :  { %v24_v38 = vld [vmem:[%s2247_s0 + $0x38] sm:$0xff]  ;;  %v25_v40 = vld [vmem:[%s2247_s0 + $0x40] sm:$0xff]  ;;  %v26_v42 = vld [vmem:[%s2247_s0 + $0x48] sm:$0xff] }
   0xc   :  { %v56_v39 = vld [vmem:[%s2247_s0 + $0x138] sm:$0xff]  ;;  %v57_v41 = vld [vmem:[%s2247_s0 + $0x140] sm:$0xff]  ;;  %v58_v43 = vld [vmem:[%s2247_s0 + $0x148] sm:$0xff] }
   0xd   :  { %1597 = vmatpush3.bf16.msra.mxu0 %v1594_v8  ;;  %1676 = vmatpush3.bf16.msra.mxu1 %v1594_v8  ;;  %v27_v44 = vld [vmem:[%s2247_s0 + $0x50] sm:$0xff]  ;;  %v28_v46 = vld [vmem:[%s2247_s0 + $0x58] sm:$0xff]  ;;  %v29_v48 = vld [vmem:[%s2247_s0 + $0x60] sm:$0xff] }
   0xe   :  { %1599 = vmatprep.subr.bf16.mxu0 %v1598_v13  ;;  %1669 = vmatprep.subr.bf16.mxu1 %v1598_v13  ;;  %v59_v45 = vld [vmem:[%s2247_s0 + $0x150] sm:$0xff]  ;;  %v60_v47 = vld [vmem:[%s2247_s0 + $0x158] sm:$0xff]  ;;  %v61_v49 = vld [vmem:[%s2247_s0 + $0x160] sm:$0xff] }
   0xf   :  { %v30_v50 = vld [vmem:[%s2247_s0 + $0x68] sm:$0xff]  ;;  %v31_v52 = vld [vmem:[%s2247_s0 + $0x70] sm:$0xff]  ;;  %v32_v54 = vld [vmem:[%s2247_s0 + $0x78] sm:$0xff] }
  0x10   :  { %v62_v51 = vld [vmem:[%s2247_s0 + $0x168] sm:$0xff]  ;;  %v63_v53 = vld [vmem:[%s2247_s0 + $0x170] sm:$0xff]  ;;  %v64_v55 = vld [vmem:[%s2247_s0 + $0x178] sm:$0xff] }
  0x11   :  { %1601 = vmatpush3.bf16.msra.mxu0 %v1598_v13  ;;  %1677 = vmatpush3.bf16.msra.mxu1 %v1598_v13  ;;  %v33_v56 = vld [vmem:[%s2247_s0 + $0x80] sm:$0xff]  ;;  %v34_v58 = vld [vmem:[%s2247_s0 + $0x88] sm:$0xff]  ;;  %v35_v60 = vld [vmem:[%s2247_s0 + $0x90] sm:$0xff] }
  0x12   :  { %1603 = vmatprep.subr.bf16.mxu0 %v1602_v16  ;;  %1670 = vmatprep.subr.bf16.mxu1 %v1602_v16  ;;  %v65_v57 = vld [vmem:[%s2247_s0 + $0x180] sm:$0xff]  ;;  %v66_v59 = vld [vmem:[%s2247_s0 + $0x188] sm:$0xff]  ;;  %v67_v61 = vld [vmem:[%s2247_s0 + $0x190] sm:$0xff] }
  0x13   :  { %v36_v62 = vld [vmem:[%s2247_s0 + $0x98] sm:$0xff]  ;;  %v37_v0 = vld [vmem:[%s2247_s0 + $0xa0] sm:$0xff]  ;;  %v38_v2 = vld [vmem:[%s2247_s0 + $0xa8] sm:$0xff] }
  0x14   :  { %v68_v63 = vld [vmem:[%s2247_s0 + $0x198] sm:$0xff]  ;;  %v69_v1 = vld [vmem:[%s2247_s0 + $0x1a0] sm:$0xff]  ;;  %v70_v3 = vld [vmem:[%s2247_s0 + $0x1a8] sm:$0xff] }
  0x15   :  { %1605 = vmatpush3.bf16.msra.mxu0 %v1602_v16  ;;  %1678 = vmatpush3.bf16.msra.mxu1 %v1602_v16  ;;  %v39_v4 = vld [vmem:[%s2247_s0 + $0xb0] sm:$0xff]  ;;  %v40_v6 = vld [vmem:[%s2247_s0 + $0xb8] sm:$0xff]  ;;  %v41_v8 = vld [vmem:[%s2247_s0 + $0xc0] sm:$0xff] }
  0x16   :  { %1607 = vmatprep.subr.bf16.mxu0 %v1606_v19  ;;  %1671 = vmatprep.subr.bf16.mxu1 %v1606_v19  ;;  %v71_v5 = vld [vmem:[%s2247_s0 + $0x1b0] sm:$0xff]  ;;  %v72_v7 = vld [vmem:[%s2247_s0 + $0x1b8] sm:$0xff]  ;;  %v73_v9 = vld [vmem:[%s2247_s0 + $0x1c0] sm:$0xff] }
  0x17   :  { %v42_v10 = vld [vmem:[%s2247_s0 + $0xc8] sm:$0xff]  ;;  %v43_v12 = vld [vmem:[%s2247_s0 + $0xd0] sm:$0xff]  ;;  %v44_v14 = vld [vmem:[%s2247_s0 + $0xd8] sm:$0xff] }
  0x18   :  { %v74_v11 = vld [vmem:[%s2247_s0 + $0x1c8] sm:$0xff]  ;;  %v75_v13 = vld [vmem:[%s2247_s0 + $0x1d0] sm:$0xff]  ;;  %v76_v15 = vld [vmem:[%s2247_s0 + $0x1d8] sm:$0xff] }
  0x19   :  { %1609 = vmatpush3.bf16.msra.mxu0 %v1606_v19  ;;  %1679 = vmatpush3.bf16.msra.mxu1 %v1606_v19  ;;  %v45_v16 = vld [vmem:[%s2247_s0 + $0xe0] sm:$0xff]  ;;  %v46_v18 = vld [vmem:[%s2247_s0 + $0xe8] sm:$0xff]  ;;  %v47_v20 = vld [vmem:[%s2247_s0 + $0xf0] sm:$0xff] }
  0x1a   :  { %1611 = vmatprep.subr.bf16.mxu0 %v1610_v22  ;;  %1672 = vmatprep.subr.bf16.mxu1 %v1610_v22  ;;  %v77_v17 = vld [vmem:[%s2247_s0 + $0x1e0] sm:$0xff]  ;;  %v78_v19 = vld [vmem:[%s2247_s0 + $0x1e8] sm:$0xff]  ;;  %v79_v21 = vld [vmem:[%s2247_s0 + $0x1f0] sm:$0xff] }
  0x1b   :  { %v80_v23 = vld [vmem:[%s2247_s0 + $0x1f8] sm:$0xff]  ;;  %v2004_v24 = vld [vmem:[%s2248_s3] sm:$0xff] }
  0x1d   :  { %1613 = vmatpush3.bf16.msra.mxu0 %v1610_v22  ;;  %1680 = vmatpush3.bf16.msra.mxu1 %v1610_v22  ;;  %v48_v22 = vld [vmem:[%s2247_s0 + $0xf8] sm:$0xff] }
  0x1e   :  { %1615 = vmatprep.subr.bf16.mxu0 %v1614_v25  ;;  %1673 = vmatprep.subr.bf16.mxu1 %v1614_v25 }
  0x21   :  { %1617 = vmatpush3.bf16.msra.mxu0 %v1614_v25  ;;  %1681 = vmatpush3.bf16.msra.mxu1 %v1614_v25  ;;  %v2009_v25 = vld [vmem:[%s2248_s3 + $0x8] sm:$0xff] }
  0x24   :  { %1403 = vmatmul.mubr.f32.vlgmr.msra.gmra.mrb[0].mxu0 %v18_v26  ;;  %1451 = vmatmul.mubr.f32.vlgmr.msra.gmra.mrb[0].mxu1 %v50_v27  ;;  %v2014_v26 = vld [vmem:[%s2248_s3 + $0x10] sm:$0xff]  ;;  %v2019_v27 = vld [vmem:[%s2248_s3 + $0x18] sm:$0xff] }
  0x25   :  { %1405 = vmatprep.mubr.f32.mxu0 %v19_v28  ;;  %1453 = vmatprep.mubr.f32.mxu1 %v51_v29  ;;  %v2024_v28 = vld [vmem:[%s2249_s2] ss:$0 sm:$0xff]  ;;  %s2156_s2 = smov 0  }
  0x28   :  { %1406 = vmatmul.mubr.f32.gmra.mrb[2].mxu0 %v20_v30  ;;  %1454 = vmatmul.mubr.f32.gmra.mrb[2].mxu1 %v52_v31 }
  0x29   :  { %1408 = vmatprep.mubr.f32.mxu0 %v21_v32  ;;  %1456 = vmatprep.mubr.f32.mxu1 %v53_v33 }
  0x2c   :  { %1409 = vmatmul.mubr.f32.gmra.mrb[4].mxu0 %v22_v34  ;;  %1457 = vmatmul.mubr.f32.gmra.mrb[4].mxu1 %v54_v35 }
  0x2d   :  { %1411 = vmatprep.mubr.f32.mxu0 %v23_v36  ;;  %1459 = vmatprep.mubr.f32.mxu1 %v55_v37 }
  0x30   :  { %1412 = vmatmul.mubr.f32.gmra.mrb[6].mxu0 %v24_v38  ;;  %1460 = vmatmul.mubr.f32.gmra.mrb[6].mxu1 %v56_v39 }
  0x31   :  { %1414 = vmatprep.mubr.f32.mxu0 %v25_v40  ;;  %1462 = vmatprep.mubr.f32.mxu1 %v57_v41 }
  0x34   :  { %1415 = vmatmul.mubr.f32.gmra.mrb[8].mxu0 %v26_v42  ;;  %1463 = vmatmul.mubr.f32.gmra.mrb[8].mxu1 %v58_v43 }
  0x35   :  { %1417 = vmatprep.mubr.f32.mxu0 %v27_v44  ;;  %1465 = vmatprep.mubr.f32.mxu1 %v59_v45 }
  0x38   :  { %1418 = vmatmul.mubr.f32.gmra.mrb[10].mxu0 %v28_v46  ;;  %1466 = vmatmul.mubr.f32.gmra.mrb[10].mxu1 %v60_v47 }
  0x39   :  { %1420 = vmatprep.mubr.f32.mxu0 %v29_v48  ;;  %1468 = vmatprep.mubr.f32.mxu1 %v61_v49 }
  0x3c   :  { %1421 = vmatmul.mubr.f32.gmra.mrb[12].mxu0 %v30_v50  ;;  %1469 = vmatmul.mubr.f32.gmra.mrb[12].mxu1 %v62_v51 }
  0x3d   :  { %1423 = vmatprep.mubr.f32.mxu0 %v31_v52  ;;  %1471 = vmatprep.mubr.f32.mxu1 %v63_v53 }
  0x40   :  { %1424 = vmatmul.mubr.f32.gmra.mrb[14].mxu0 %v32_v54  ;;  %1472 = vmatmul.mubr.f32.gmra.mrb[14].mxu1 %v64_v55 }
  0x41   :  { %1426 = vmatprep.mubr.f32.mxu0 %v33_v56  ;;  %1474 = vmatprep.mubr.f32.mxu1 %v65_v57 }
  0x44   :  { %1427 = vmatmul.mubr.f32.gmra.mrb[16].mxu0 %v34_v58  ;;  %1475 = vmatmul.mubr.f32.gmra.mrb[16].mxu1 %v66_v59 }
  0x45   :  { %1429 = vmatprep.mubr.f32.mxu0 %v35_v60  ;;  %1477 = vmatprep.mubr.f32.mxu1 %v67_v61 }
  0x48   :  { %1430 = vmatmul.mubr.f32.gmra.mrb[18].mxu0 %v36_v62  ;;  %1478 = vmatmul.mubr.f32.gmra.mrb[18].mxu1 %v68_v63 }
  0x49   :  { %1432 = vmatprep.mubr.f32.mxu0 %v37_v0  ;;  %1480 = vmatprep.mubr.f32.mxu1 %v69_v1 }
  0x4c   :  { %1433 = vmatmul.mubr.f32.gmra.mrb[20].mxu0 %v38_v2  ;;  %1481 = vmatmul.mubr.f32.gmra.mrb[20].mxu1 %v70_v3 }
  0x4d   :  { %1435 = vmatprep.mubr.f32.mxu0 %v39_v4  ;;  %1483 = vmatprep.mubr.f32.mxu1 %v71_v5 }
  0x50   :  { %1436 = vmatmul.mubr.f32.gmra.mrb[22].mxu0 %v40_v6  ;;  %1484 = vmatmul.mubr.f32.gmra.mrb[22].mxu1 %v72_v7 }
  0x51   :  { %1438 = vmatprep.mubr.f32.mxu0 %v41_v8  ;;  %1486 = vmatprep.mubr.f32.mxu1 %v73_v9 }
  0x54   :  { %1439 = vmatmul.mubr.f32.gmra.mrb[24].mxu0 %v42_v10  ;;  %1487 = vmatmul.mubr.f32.gmra.mrb[24].mxu1 %v74_v11 }
  0x55   :  { %1441 = vmatprep.mubr.f32.mxu0 %v43_v12  ;;  %1489 = vmatprep.mubr.f32.mxu1 %v75_v13 }
  0x58   :  { %1442 = vmatmul.mubr.f32.gmra.mrb[26].mxu0 %v44_v14  ;;  %1490 = vmatmul.mubr.f32.gmra.mrb[26].mxu1 %v76_v15 }
  0x59   :  { %1444 = vmatprep.mubr.f32.mxu0 %v45_v16  ;;  %1492 = vmatprep.mubr.f32.mxu1 %v77_v17 }
  0x5c   :  { %1445 = vmatmul.mubr.f32.gmra.mrb[28].mxu0 %v46_v18  ;;  %1493 = vmatmul.mubr.f32.gmra.mrb[28].mxu1 %v78_v19 }
  0x5d   :  { %1447 = vmatprep.mubr.f32.mxu0 %v47_v20  ;;  %1495 = vmatprep.mubr.f32.mxu1 %v79_v21 }
  0x60   :  { %1448 = vmatmul.mubr.f32.gmra.mrb[30].mxu0 %v48_v22  ;;  %1496 = vmatmul.mubr.f32.gmra.mrb[30].mxu1 %v80_v23 }
  0xf7   :  { %v1404_v29 = vpop.f32.mrb[0].mxu0  ;;  %v1452_v30 = vpop.f32.mrb[0].mxu1 }
  0xf8   :  { %v176_v31 = vadd.f32 %v1404_v29, %v2024_v28  ;;  %v336_v32 = vadd.f32 %v1452_v30, %v2024_v28  ;;  %v170_v33 = vpop.f32.mrb[1].mxu0  ;;  %v330_v34 = vpop.f32.mrb[1].mxu1 }
  0xf9   :  { %v171_v35 = vadd.f32 %v2024_v28, %v170_v33  ;;  %v331_v36 = vadd.f32 %v2024_v28, %v330_v34 }
  0xfa   :  { %491 = vst.msk [vmem:[#allocation2 + $0x8] sm:$0xff] %vm489_vm0, %v176_v31  ;;  %523 = vst.msk [vmem:[#allocation2 + $0x108] sm:$0xff] %vm489_vm0, %v336_v32 }
  0xfb   :  { %490 = vst.msk [vmem:[#allocation2] sm:$0xff] %vm489_vm0, %v171_v35  ;;  %522 = vst.msk [vmem:[#allocation2 + $0x100] sm:$0xff] %vm489_vm0, %v331_v36  ;;  %v1407_v37 = vpop.f32.mrb[2].mxu0  ;;  %v1455_v38 = vpop.f32.mrb[2].mxu1 }
  0xfc   :  { %v186_v39 = vadd.f32 %v1407_v37, %v2024_v28  ;;  %v346_v40 = vadd.f32 %v1455_v38, %v2024_v28  ;;  %v180_v41 = vpop.f32.mrb[3].mxu0  ;;  %v340_v42 = vpop.f32.mrb[3].mxu1 }
  0xfd   :  { %v181_v43 = vadd.f32 %v2024_v28, %v180_v41  ;;  %v341_v44 = vadd.f32 %v2024_v28, %v340_v42 }
  0xfe   :  { %493 = vst.msk [vmem:[#allocation2 + $0x18] sm:$0xff] %vm489_vm0, %v186_v39  ;;  %525 = vst.msk [vmem:[#allocation2 + $0x118] sm:$0xff] %vm489_vm0, %v346_v40 }
  0xff   :  { %492 = vst.msk [vmem:[#allocation2 + $0x10] sm:$0xff] %vm489_vm0, %v181_v43  ;;  %524 = vst.msk [vmem:[#allocation2 + $0x110] sm:$0xff] %vm489_vm0, %v341_v44  ;;  %v1410_v45 = vpop.f32.mrb[4].mxu0  ;;  %v1458_v46 = vpop.f32.mrb[4].mxu1 }
 0x100   :  { %v196_v47 = vadd.f32 %v1410_v45, %v2024_v28  ;;  %v356_v48 = vadd.f32 %v1458_v46, %v2024_v28  ;;  %v190_v49 = vpop.f32.mrb[5].mxu0  ;;  %v350_v50 = vpop.f32.mrb[5].mxu1 }
 0x101   :  { %v191_v51 = vadd.f32 %v2024_v28, %v190_v49  ;;  %v351_v52 = vadd.f32 %v2024_v28, %v350_v50 }
 0x102   :  { %495 = vst.msk [vmem:[#allocation2 + $0x28] sm:$0xff] %vm489_vm0, %v196_v47  ;;  %527 = vst.msk [vmem:[#allocation2 + $0x128] sm:$0xff] %vm489_vm0, %v356_v48 }
 0x103   :  { %494 = vst.msk [vmem:[#allocation2 + $0x20] sm:$0xff] %vm489_vm0, %v191_v51  ;;  %526 = vst.msk [vmem:[#allocation2 + $0x120] sm:$0xff] %vm489_vm0, %v351_v52  ;;  %v1413_v53 = vpop.f32.mrb[6].mxu0  ;;  %v1461_v54 = vpop.f32.mrb[6].mxu1 }
 0x104   :  { %v206_v55 = vadd.f32 %v1413_v53, %v2024_v28  ;;  %v366_v56 = vadd.f32 %v1461_v54, %v2024_v28  ;;  %v200_v57 = vpop.f32.mrb[7].mxu0  ;;  %v360_v58 = vpop.f32.mrb[7].mxu1 }
 0x105   :  { %v201_v59 = vadd.f32 %v2024_v28, %v200_v57  ;;  %v361_v60 = vadd.f32 %v2024_v28, %v360_v58 }
 0x106   :  { %497 = vst.msk [vmem:[#allocation2 + $0x38] sm:$0xff] %vm489_vm0, %v206_v55  ;;  %529 = vst.msk [vmem:[#allocation2 + $0x138] sm:$0xff] %vm489_vm0, %v366_v56 }
 0x107   :  { %496 = vst.msk [vmem:[#allocation2 + $0x30] sm:$0xff] %vm489_vm0, %v201_v59  ;;  %528 = vst.msk [vmem:[#allocation2 + $0x130] sm:$0xff] %vm489_vm0, %v361_v60  ;;  %v1416_v61 = vpop.f32.mrb[8].mxu0  ;;  %v1464_v62 = vpop.f32.mrb[8].mxu1 }
 0x108   :  { %v216_v63 = vadd.f32 %v1416_v61, %v2024_v28  ;;  %v376_v0 = vadd.f32 %v1464_v62, %v2024_v28  ;;  %v210_v1 = vpop.f32.mrb[9].mxu0  ;;  %v370_v2 = vpop.f32.mrb[9].mxu1 }
 0x109   :  { %v211_v3 = vadd.f32 %v2024_v28, %v210_v1  ;;  %v371_v4 = vadd.f32 %v2024_v28, %v370_v2 }
 0x10a   :  { %499 = vst.msk [vmem:[#allocation2 + $0x48] sm:$0xff] %vm489_vm0, %v216_v63  ;;  %531 = vst.msk [vmem:[#allocation2 + $0x148] sm:$0xff] %vm489_vm0, %v376_v0 }
 0x10b   :  { %498 = vst.msk [vmem:[#allocation2 + $0x40] sm:$0xff] %vm489_vm0, %v211_v3  ;;  %530 = vst.msk [vmem:[#allocation2 + $0x140] sm:$0xff] %vm489_vm0, %v371_v4  ;;  %v1419_v5 = vpop.f32.mrb[10].mxu0  ;;  %v1467_v6 = vpop.f32.mrb[10].mxu1 }
 0x10c   :  { %v226_v7 = vadd.f32 %v1419_v5, %v2024_v28  ;;  %v386_v8 = vadd.f32 %v1467_v6, %v2024_v28  ;;  %v220_v9 = vpop.f32.mrb[11].mxu0  ;;  %v380_v10 = vpop.f32.mrb[11].mxu1 }
 0x10d   :  { %v221_v11 = vadd.f32 %v2024_v28, %v220_v9  ;;  %v381_v12 = vadd.f32 %v2024_v28, %v380_v10 }
 0x10e   :  { %501 = vst.msk [vmem:[#allocation2 + $0x58] sm:$0xff] %vm489_vm0, %v226_v7  ;;  %533 = vst.msk [vmem:[#allocation2 + $0x158] sm:$0xff] %vm489_vm0, %v386_v8 }
 0x10f   :  { %500 = vst.msk [vmem:[#allocation2 + $0x50] sm:$0xff] %vm489_vm0, %v221_v11  ;;  %532 = vst.msk [vmem:[#allocation2 + $0x150] sm:$0xff] %vm489_vm0, %v381_v12  ;;  %v1422_v13 = vpop.f32.mrb[12].mxu0  ;;  %v1470_v14 = vpop.f32.mrb[12].mxu1 }
 0x110   :  { %v236_v15 = vadd.f32 %v1422_v13, %v2024_v28  ;;  %v396_v16 = vadd.f32 %v1470_v14, %v2024_v28  ;;  %v230_v17 = vpop.f32.mrb[13].mxu0  ;;  %v390_v18 = vpop.f32.mrb[13].mxu1 }
 0x111   :  { %v231_v19 = vadd.f32 %v2024_v28, %v230_v17  ;;  %v391_v20 = vadd.f32 %v2024_v28, %v390_v18 }
 0x112   :  { %503 = vst.msk [vmem:[#allocation2 + $0x68] sm:$0xff] %vm489_vm0, %v236_v15  ;;  %535 = vst.msk [vmem:[#allocation2 + $0x168] sm:$0xff] %vm489_vm0, %v396_v16 }
 0x113   :  { %502 = vst.msk [vmem:[#allocation2 + $0x60] sm:$0xff] %vm489_vm0, %v231_v19  ;;  %534 = vst.msk [vmem:[#allocation2 + $0x160] sm:$0xff] %vm489_vm0, %v391_v20  ;;  %v1425_v21 = vpop.f32.mrb[14].mxu0  ;;  %v1473_v22 = vpop.f32.mrb[14].mxu1 }
 0x114   :  { %v246_v23 = vadd.f32 %v1425_v21, %v2024_v28  ;;  %v406_v29 = vadd.f32 %v1473_v22, %v2024_v28  ;;  %v240_v30 = vpop.f32.mrb[15].mxu0  ;;  %v400_v31 = vpop.f32.mrb[15].mxu1 }
 0x115   :  { %v241_v32 = vadd.f32 %v2024_v28, %v240_v30  ;;  %v401_v33 = vadd.f32 %v2024_v28, %v400_v31 }
 0x116   :  { %505 = vst.msk [vmem:[#allocation2 + $0x78] sm:$0xff] %vm489_vm0, %v246_v23  ;;  %537 = vst.msk [vmem:[#allocation2 + $0x178] sm:$0xff] %vm489_vm0, %v406_v29 }
 0x117   :  { %504 = vst.msk [vmem:[#allocation2 + $0x70] sm:$0xff] %vm489_vm0, %v241_v32  ;;  %536 = vst.msk [vmem:[#allocation2 + $0x170] sm:$0xff] %vm489_vm0, %v401_v33  ;;  %v1428_v34 = vpop.f32.mrb[16].mxu0  ;;  %v1476_v35 = vpop.f32.mrb[16].mxu1 }
 0x118   :  { %v256_v36 = vadd.f32 %v1428_v34, %v2024_v28  ;;  %v416_v37 = vadd.f32 %v1476_v35, %v2024_v28  ;;  %v250_v38 = vpop.f32.mrb[17].mxu0  ;;  %v410_v39 = vpop.f32.mrb[17].mxu1 }
 0x119   :  { %v251_v40 = vadd.f32 %v2024_v28, %v250_v38  ;;  %v411_v41 = vadd.f32 %v2024_v28, %v410_v39  ;;  %v2154_v39 = vmov 0.0  }
 0x11a   :  { %507 = vst.msk [vmem:[#allocation2 + $0x88] sm:$0xff] %vm489_vm0, %v256_v36  ;;  %539 = vst.msk [vmem:[#allocation2 + $0x188] sm:$0xff] %vm489_vm0, %v416_v37 }
 0x11b   :  { %506 = vst.msk [vmem:[#allocation2 + $0x80] sm:$0xff] %vm489_vm0, %v251_v40  ;;  %538 = vst.msk [vmem:[#allocation2 + $0x180] sm:$0xff] %vm489_vm0, %v411_v41  ;;  %v1431_v42 = vpop.f32.mrb[18].mxu0  ;;  %v1479_v43 = vpop.f32.mrb[18].mxu1 }
 0x11c   :  { %v266_v44 = vadd.f32 %v1431_v42, %v2024_v28  ;;  %v426_v45 = vadd.f32 %v1479_v43, %v2024_v28  ;;  %v260_v46 = vpop.f32.mrb[19].mxu0  ;;  %v420_v47 = vpop.f32.mrb[19].mxu1 }
 0x11d   :  { %v261_v48 = vadd.f32 %v2024_v28, %v260_v46  ;;  %v421_v49 = vadd.f32 %v2024_v28, %v420_v47 }
 0x11e   :  { %509 = vst.msk [vmem:[#allocation2 + $0x98] sm:$0xff] %vm489_vm0, %v266_v44  ;;  %541 = vst.msk [vmem:[#allocation2 + $0x198] sm:$0xff] %vm489_vm0, %v426_v45 }
 0x11f   :  { %508 = vst.msk [vmem:[#allocation2 + $0x90] sm:$0xff] %vm489_vm0, %v261_v48  ;;  %540 = vst.msk [vmem:[#allocation2 + $0x190] sm:$0xff] %vm489_vm0, %v421_v49  ;;  %v1434_v50 = vpop.f32.mrb[20].mxu0  ;;  %v1482_v51 = vpop.f32.mrb[20].mxu1 }
 0x120   :  { %v276_v52 = vadd.f32 %v1434_v50, %v2024_v28  ;;  %v436_v53 = vadd.f32 %v1482_v51, %v2024_v28  ;;  %v270_v54 = vpop.f32.mrb[21].mxu0  ;;  %v430_v55 = vpop.f32.mrb[21].mxu1 }
 0x121   :  { %v271_v56 = vadd.f32 %v2024_v28, %v270_v54  ;;  %v431_v57 = vadd.f32 %v2024_v28, %v430_v55 }
 0x122   :  { %511 = vst.msk [vmem:[#allocation2 + $0xa8] sm:$0xff] %vm489_vm0, %v276_v52  ;;  %543 = vst.msk [vmem:[#allocation2 + $0x1a8] sm:$0xff] %vm489_vm0, %v436_v53 }
 0x123   :  { %510 = vst.msk [vmem:[#allocation2 + $0xa0] sm:$0xff] %vm489_vm0, %v271_v56  ;;  %542 = vst.msk [vmem:[#allocation2 + $0x1a0] sm:$0xff] %vm489_vm0, %v431_v57  ;;  %v1437_v58 = vpop.f32.mrb[22].mxu0  ;;  %v1485_v59 = vpop.f32.mrb[22].mxu1 }
 0x124   :  { %v286_v60 = vadd.f32 %v1437_v58, %v2024_v28  ;;  %v446_v61 = vadd.f32 %v1485_v59, %v2024_v28  ;;  %v280_v62 = vpop.f32.mrb[23].mxu0  ;;  %v440_v63 = vpop.f32.mrb[23].mxu1 }
 0x125   :  { %v281_v0 = vadd.f32 %v2024_v28, %v280_v62  ;;  %v441_v1 = vadd.f32 %v2024_v28, %v440_v63 }
 0x126   :  { %513 = vst.msk [vmem:[#allocation2 + $0xb8] sm:$0xff] %vm489_vm0, %v286_v60  ;;  %545 = vst.msk [vmem:[#allocation2 + $0x1b8] sm:$0xff] %vm489_vm0, %v446_v61 }
 0x127   :  { %512 = vst.msk [vmem:[#allocation2 + $0xb0] sm:$0xff] %vm489_vm0, %v281_v0  ;;  %544 = vst.msk [vmem:[#allocation2 + $0x1b0] sm:$0xff] %vm489_vm0, %v441_v1  ;;  %v1440_v2 = vpop.f32.mrb[24].mxu0  ;;  %v1488_v3 = vpop.f32.mrb[24].mxu1 }
 0x128   :  { %v296_v4 = vadd.f32 %v1440_v2, %v2024_v28  ;;  %v456_v5 = vadd.f32 %v1488_v3, %v2024_v28  ;;  %v290_v6 = vpop.f32.mrb[25].mxu0  ;;  %v450_v7 = vpop.f32.mrb[25].mxu1 }
 0x129   :  { %v291_v8 = vadd.f32 %v2024_v28, %v290_v6  ;;  %v451_v9 = vadd.f32 %v2024_v28, %v450_v7 }
 0x12a   :  { %515 = vst.msk [vmem:[#allocation2 + $0xc8] sm:$0xff] %vm489_vm0, %v296_v4  ;;  %547 = vst.msk [vmem:[#allocation2 + $0x1c8] sm:$0xff] %vm489_vm0, %v456_v5 }
 0x12b   :  { %514 = vst.msk [vmem:[#allocation2 + $0xc0] sm:$0xff] %vm489_vm0, %v291_v8  ;;  %546 = vst.msk [vmem:[#allocation2 + $0x1c0] sm:$0xff] %vm489_vm0, %v451_v9  ;;  %v1443_v10 = vpop.f32.mrb[26].mxu0  ;;  %v1491_v11 = vpop.f32.mrb[26].mxu1 }
 0x12c   :  { %v306_v12 = vadd.f32 %v1443_v10, %v2024_v28  ;;  %v466_v13 = vadd.f32 %v1491_v11, %v2024_v28  ;;  %v300_v14 = vpop.f32.mrb[27].mxu0  ;;  %v460_v15 = vpop.f32.mrb[27].mxu1 }
 0x12d   :  { %v301_v16 = vadd.f32 %v2024_v28, %v300_v14  ;;  %v461_v17 = vadd.f32 %v2024_v28, %v460_v15 }
 0x12e   :  { %517 = vst.msk [vmem:[#allocation2 + $0xd8] sm:$0xff] %vm489_vm0, %v306_v12  ;;  %549 = vst.msk [vmem:[#allocation2 + $0x1d8] sm:$0xff] %vm489_vm0, %v466_v13 }
 0x12f   :  { %516 = vst.msk [vmem:[#allocation2 + $0xd0] sm:$0xff] %vm489_vm0, %v301_v16  ;;  %548 = vst.msk [vmem:[#allocation2 + $0x1d0] sm:$0xff] %vm489_vm0, %v461_v17  ;;  %v1446_v18 = vpop.f32.mrb[28].mxu0  ;;  %v1494_v19 = vpop.f32.mrb[28].mxu1 }
 0x130   :  { %v316_v20 = vadd.f32 %v1446_v18, %v2024_v28  ;;  %v476_v21 = vadd.f32 %v1494_v19, %v2024_v28  ;;  %v310_v22 = vpop.f32.mrb[29].mxu0  ;;  %v470_v23 = vpop.f32.mrb[29].mxu1 }
 0x131   :  { %v311_v29 = vadd.f32 %v2024_v28, %v310_v22  ;;  %v471_v30 = vadd.f32 %v2024_v28, %v470_v23 }
 0x132   :  { %519 = vst.msk [vmem:[#allocation2 + $0xe8] sm:$0xff] %vm489_vm0, %v316_v20  ;;  %551 = vst.msk [vmem:[#allocation2 + $0x1e8] sm:$0xff] %vm489_vm0, %v476_v21 }
 0x133   :  { %518 = vst.msk [vmem:[#allocation2 + $0xe0] sm:$0xff] %vm489_vm0, %v311_v29  ;;  %550 = vst.msk [vmem:[#allocation2 + $0x1e0] sm:$0xff] %vm489_vm0, %v471_v30  ;;  %v1449_v31 = vpop.f32.mrb[30].mxu0  ;;  %v1497_v32 = vpop.f32.mrb[30].mxu1 }
 0x134   :  { %v326_v33 = vadd.f32 %v1449_v31, %v2024_v28  ;;  %v486_v34 = vadd.f32 %v1497_v32, %v2024_v28  ;;  %v320_v35 = vpop.f32.mrb[31].mxu0  ;;  %v480_v36 = vpop.f32.mrb[31].mxu1 }
 0x135   :  { %v321_v37 = vadd.f32 %v2024_v28, %v320_v35  ;;  %v481_v38 = vadd.f32 %v2024_v28, %v480_v36 }
 0x136   :  { %521 = vst.msk [vmem:[#allocation2 + $0xf8] sm:$0xff] %vm489_vm0, %v326_v33  ;;  %553 = vst.msk [vmem:[#allocation2 + $0x1f8] sm:$0xff] %vm489_vm0, %v486_v34 }
 0x137   :  { %520 = vst.msk [vmem:[#allocation2 + $0xf0] sm:$0xff] %vm489_vm0, %v321_v37  ;;  %552 = vst.msk [vmem:[#allocation2 + $0x1f0] sm:$0xff] %vm489_vm0, %v481_v38 }
 0x138 LB: > { %v2164_v28 = vpack.c.bf16 %v2009_v25, %v2004_v24  ;;  %v1733_v40 = vmov 0.0|0.0   ;;  %v2171_v41 = vpack.c.bf16 %v2019_v27, %v2014_v26  ;;  %vm1734_vm1 = vmmov 0   ;;  %s1227_s3 = sshll.u32 %s1731_s2, 4  ;;  %s563_s2 = sadd.s32 1, %s1731_s2   ;;  %s1731_s2 = sphi %s2156_s2, %s563_s2   ;;  %v1727_v39 = vphi %v2154_v39, %v2250_v39  }
 0x139   : > { %1618 = vmatprep.subr.bf16.mxu0 %v1733_v40  ;;  %1624 = vmatprep.subr.bf16.mxu1 %v1733_v40  ;;  %v1735_v42 = vmov 0.0   ;;  %s2192_s23 = scalar_lea.vmem [#allocation2], %s1227_s3  ;;  %p560_p0 = scmp.ge.s32.totalorder %s563_s2, 32  }
 0x13a   : > { %1620 = vmatpush3.bf16.msra.mxu0 %v2164_v28  ;;  %1506 = vmatprep.mubr.msk.f32.mxu0 %vm1734_vm1, %v1735_v42  ;;  %vm1189_vm2 = vcmask (%p560_p0), 254976  }
 0x13b   : > { %1621 = vmatprep.subr.bf16.mxu0 %v1733_v40  ;;  %1626 = vmatpush3.bf16.msra.mxu1 %v2164_v28 }
 0x13c   : > { %1627 = vmatprep.subr.bf16.mxu1 %v1733_v40  ;;  %1517 = vmatprep.mubr.msk.f32.mxu1 %vm1734_vm1, %v1735_v42 }
 0x13e   : > { %1623 = vmatpush3.bf16.msra.mxu0 %v2171_v41  ;;  %v567_v43 = vld [vmem:[%s2192_s23] sm:$0x3]  ;;  %v1230_v48 = vld [vmem:[%s2192_s23 + $0x2] sm:$0x3]  ;;  %v1233_v53 = vld [vmem:[%s2192_s23 + $0x4] sm:$0x3] }
 0x13f   : > { %1629 = vmatpush3.bf16.msra.mxu1 %v2171_v41  ;;  %1630 = vmatprep.subr.bf16.mxu0 %v1733_v40  ;;  %v1236_v58 = vld [vmem:[%s2192_s23 + $0x6] sm:$0x3]  ;;  %v1239_v63 = vld [vmem:[%s2192_s23 + $0x8] sm:$0x3]  ;;  %v1242_v4 = vld [vmem:[%s2192_s23 + $0xa] sm:$0x3] }
 0x140   : > { %1636 = vmatprep.subr.bf16.mxu1 %v1733_v40  ;;  %v1245_v9 = vld [vmem:[%s2192_s23 + $0xc] sm:$0x3]  ;;  %v1248_v14 = vld [vmem:[%s2192_s23 + $0xe] sm:$0x3] }
 0x141   : > { %1507 = vmatmul.mubr.msk.f32.vlgmr.msra.gmra.mrb[0].mxu0 %vm489_vm0, %v1727_v39 }
 0x142   : > { %1632 = vmatpush3.bf16.msra.mxu0 %v2164_v28  ;;  %1528 = vmatprep.mubr.msk.f32.mxu0 %vm1734_vm1, %v1735_v42 }
 0x143   : > { %1633 = vmatprep.subr.bf16.mxu0 %v1733_v40 }
 0x146   : > { %1635 = vmatpush3.bf16.msra.mxu0 %v2171_v41 }
 0x147   : > { %1642 = vmatprep.subr.bf16.mxu0 %v1733_v40 }
 0x214   : > { %v637_v44 = vpop.f32.mrb[0].mxu0 }
 0x215   : > { %v641_v45 = vadd.f32 %v637_v44, %v567_v43  ;;  %v1508_v46 = vpop.f32.mrb[1].mxu0 }
 0x217   : > { %1701 = vtanh.f32 %v641_v45 }
 0x221   : > { %v1702_v47 = vpop.eup %1701 }
 0x222   : > { %1518 = vmatmul.mubr.msk.f32.vlgmr.msra.gmra.mrb[0].mxu1 %vm489_vm0, %v1702_v47 }
 0x223   : > { %1638 = vmatpush3.bf16.msra.mxu1 %v2164_v28  ;;  %1539 = vmatprep.mubr.msk.f32.mxu1 %vm1734_vm1, %v1735_v42 }
 0x224   : > { %1639 = vmatprep.subr.bf16.mxu1 %v1733_v40 }
 0x227   : > { %1641 = vmatpush3.bf16.msra.mxu1 %v2171_v41 }
 0x228   : > { %1648 = vmatprep.subr.bf16.mxu1 %v1733_v40 }
 0x2f5   : > { %v715_v49 = vpop.f32.mrb[0].mxu1 }
 0x2f6   : > { %v719_v50 = vadd.f32 %v1230_v48, %v715_v49  ;;  %v1519_v51 = vpop.f32.mrb[1].mxu1 }
 0x2f8   : > { %1703 = vtanh.f32 %v719_v50 }
 0x302   : > { %v1704_v52 = vpop.eup %1703 }
 0x303   : > { %1529 = vmatmul.mubr.msk.f32.vlgmr.msra.gmra.mrb[2].mxu0 %vm489_vm0, %v1704_v52 }
 0x304   : > { %1644 = vmatpush3.bf16.msra.mxu0 %v2164_v28  ;;  %1550 = vmatprep.mubr.msk.f32.mxu0 %vm1734_vm1, %v1735_v42 }
 0x305   : > { %1645 = vmatprep.subr.bf16.mxu0 %v1733_v40 }
 0x308   : > { %1647 = vmatpush3.bf16.msra.mxu0 %v2171_v41 }
 0x309   : > { %1654 = vmatprep.subr.bf16.mxu0 %v1733_v40 }
 0x3d6   : > { %v793_v54 = vpop.f32.mrb[2].mxu0 }
 0x3d7   : > { %v797_v55 = vadd.f32 %v1233_v53, %v793_v54  ;;  %v1530_v56 = vpop.f32.mrb[3].mxu0 }
 0x3d9   : > { %1705 = vtanh.f32 %v797_v55 }
 0x3e3   : > { %v1706_v57 = vpop.eup %1705 }
 0x3e4   : > { %1540 = vmatmul.mubr.msk.f32.vlgmr.msra.gmra.mrb[2].mxu1 %vm489_vm0, %v1706_v57 }
 0x3e5   : > { %1650 = vmatpush3.bf16.msra.mxu1 %v2164_v28  ;;  %1561 = vmatprep.mubr.msk.f32.mxu1 %vm1734_vm1, %v1735_v42 }
 0x3e6   : > { %1651 = vmatprep.subr.bf16.mxu1 %v1733_v40 }
 0x3e9   : > { %1653 = vmatpush3.bf16.msra.mxu1 %v2171_v41 }
 0x3ea   : > { %1660 = vmatprep.subr.bf16.mxu1 %v1733_v40 }
 0x4b7   : > { %v871_v59 = vpop.f32.mrb[2].mxu1 }
 0x4b8   : > { %v875_v60 = vadd.f32 %v1236_v58, %v871_v59  ;;  %v1541_v61 = vpop.f32.mrb[3].mxu1 }
 0x4ba   : > { %1707 = vtanh.f32 %v875_v60 }
 0x4c4   : > { %v1708_v62 = vpop.eup %1707 }
 0x4c5   : > { %1551 = vmatmul.mubr.msk.f32.vlgmr.msra.gmra.mrb[4].mxu0 %vm489_vm0, %v1708_v62 }
 0x4c6   : > { %1656 = vmatpush3.bf16.msra.mxu0 %v2164_v28  ;;  %1572 = vmatprep.mubr.msk.f32.mxu0 %vm1734_vm1, %v1735_v42 }
 0x4c7   : > { %1657 = vmatprep.subr.bf16.mxu0 %v1733_v40 }
 0x4ca   : > { %1659 = vmatpush3.bf16.msra.mxu0 %v2171_v41 }
 0x598   : > { %v949_v0 = vpop.f32.mrb[4].mxu0 }
 0x599   : > { %v953_v1 = vadd.f32 %v1239_v63, %v949_v0  ;;  %v1552_v2 = vpop.f32.mrb[5].mxu0 }
 0x59b   : > { %1709 = vtanh.f32 %v953_v1 }
 0x5a5   : > { %v1710_v3 = vpop.eup %1709 }
 0x5a6   : > { %1562 = vmatmul.mubr.msk.f32.vlgmr.msra.gmra.mrb[4].mxu1 %vm489_vm0, %v1710_v3 }
 0x5a7   : > { %1662 = vmatpush3.bf16.msra.mxu1 %v2164_v28  ;;  %1583 = vmatprep.mubr.msk.f32.mxu1 %vm1734_vm1, %v1735_v42 }
 0x5a8   : > { %1663 = vmatprep.subr.bf16.mxu1 %v1733_v40 }
 0x5ab   : > { %1665 = vmatpush3.bf16.msra.mxu1 %v2171_v41 }
 0x679   : > { %v1027_v5 = vpop.f32.mrb[4].mxu1 }
 0x67a   : > { %v1031_v6 = vadd.f32 %v1242_v4, %v1027_v5  ;;  %v1563_v7 = vpop.f32.mrb[5].mxu1 }
 0x67c   : > { %1711 = vtanh.f32 %v1031_v6 }
 0x686   : > { %v1712_v8 = vpop.eup %1711 }
 0x687   : > { %1573 = vmatmul.mubr.msk.f32.vlgmr.msra.gmra.mrb[6].mxu0 %vm489_vm0, %v1712_v8 }
 0x75a   : > { %v1105_v10 = vpop.f32.mrb[6].mxu0 }
 0x75b   : > { %v1109_v11 = vadd.f32 %v1245_v9, %v1105_v10  ;;  %v1574_v12 = vpop.f32.mrb[7].mxu0 }
 0x75d   : > { %1713 = vtanh.f32 %v1109_v11 }
 0x767   : > { %v1714_v13 = vpop.eup %1713 }
 0x768   : > { %1584 = vmatmul.mubr.msk.f32.vlgmr.msra.gmra.mrb[6].mxu1 %vm489_vm0, %v1714_v13 }
 0x83b   : > { %v1183_v15 = vpop.f32.mrb[6].mxu1 }
 0x83c   : > { %v1187_v16 = vadd.f32 %v1248_v14, %v1183_v15  ;;  %v1585_v17 = vpop.f32.mrb[7].mxu1 }
 0x83e   : > { %1715 = vtanh.f32 %v1187_v16 }
 0x843   :  { %562 = sbr.rel (!%p560_p0) target bundleno = 312 (0x138), region = 51 }
 0x848   : > { %v1716_v18 = vpop.eup %1715  }
 0x849   : > { %v2250_v39 = vmov %v1716_v18  ;;  %1190 = vst.msk [vmem:[%s2246_s4] sm:$0x3] (%p560_p0), %vm1189_vm2, %v1716_v18 }

</bundles_post_ra>
